<compile_context>
chip_gen: v7x
topology: tpu7x:2x2x1
jax: 0.10.0
libtpu: 0.0.40
codegen_flags: <defaults>
</compile_context>

<pallas_src>
import functools
import math

import jax
import jax.numpy as jnp
from jax.experimental import pallas as pl
from jax.experimental.pallas import tpu as pltpu

_INV_SQRT2 = 0.7071067811865476
_LN_EPS = 1e-12


# ----------------------------- static helpers ------------------------------

@functools.lru_cache(maxsize=None)
def _vmem_limit_bytes():
    """Generation-aware scoped-VMEM budget (v7x: 64 MiB physical vs 128 MiB)."""
    try:
        cap = int(pltpu.get_tpu_info().vmem_capacity_bytes)
    except Exception:
        cap = 128 * 1024 * 1024
    return int(min(64 * 1024 * 1024, cap * 3 // 4))


def _pick_tile(dim, cap):
    """Largest tile <= cap dividing dim, preferring 128- then 8-multiples.

    Never exceeds `cap` unless nothing divides at all (then one padded block of
    the full dim; callers keep `cap` large enough that this only matters at toy
    shapes -- addresses the v7x VMEM-budget review note).
    """
    if dim <= cap:
        return dim
    for step in (128, 8):
        t = (cap // step) * step
        while t >= step:
            if dim % t == 0:
                return t
            t -= step
    return dim


def _pick_head_group(num_heads, head_dim, lane_target=256):
    """Heads per attention grid step: widest group dividing num_heads whose
    lane width (g*dh) is a multiple of 128 and <= lane_target (256 fills the
    v6e/v7x MXU; v5e would also be happy with 128). Tiny models (H < 128)
    fall back to all heads in one group."""
    for g in range(num_heads, 0, -1):
        gw = g * head_dim
        if num_heads % g == 0 and gw % 128 == 0 and gw <= lane_target:
            return g
    return num_heads


def _group_major_perm(hidden, num_heads, heads_per_group):
    """Column permutation turning [Q_all|K_all|V_all] into per-head-group
    [Q_g0|K_g0|V_g0 | Q_g1|K_g1|V_g1 | ...] (head order preserved within each
    group, so the attention output layout stays the standard concat-of-heads
    and the output projection weight needs no permutation)."""
    dh = hidden // num_heads
    gw = heads_per_group * dh
    ngroups = num_heads // heads_per_group
    perm = []
    for g in range(ngroups):
        base = g * gw
        perm += list(range(base, base + gw))                             # Q
        perm += list(range(hidden + base, hidden + base + gw))           # K
        perm += list(range(2 * hidden + base, 2 * hidden + base + gw))   # V
    return jnp.asarray(perm, dtype=jnp.int32)


# ----------------------------- Pallas kernels ------------------------------

def _mm_bias_kernel(x_ref, w_ref, b_ref, o_ref, acc_ref, *, activation):
    """Tiled matmul (+bias, optional exact GELU) with f32 VMEM accumulator."""
    @pl.when(pl.program_id(2) == 0)
    def _init():
        acc_ref[...] = jnp.zeros_like(acc_ref)

    acc_ref[...] += jnp.dot(x_ref[...], w_ref[...],
                            preferred_element_type=jnp.float32)

    @pl.when(pl.program_id(2) == pl.num_programs(2) - 1)
    def _finalize():
        y = acc_ref[...] + b_ref[...]
        if activation == "gelu":
            # exact (erf) GELU in f32, matching HF BERT's default "gelu"
            y = 0.5 * y * (1.0 + jax.lax.erf(y * _INV_SQRT2))
        o_ref[...] = y.astype(o_ref.dtype)


def _mm_bias_add_ln_kernel(x_ref, w_ref, b_ref, r_ref, g_ref, beta_ref,
                           o_ref, acc_ref, *, eps):
    """Fused matmul + bias + residual add + LayerNorm (stats in f32)."""
    @pl.when(pl.program_id(1) == 0)
    def _init():
        acc_ref[...] = jnp.zeros_like(acc_ref)

    acc_ref[...] += jnp.dot(x_ref[...], w_ref[...],
                            preferred_element_type=jnp.float32)

    @pl.when(pl.program_id(1) == pl.num_programs(1) - 1)
    def _finalize():
        y = acc_ref[...] + b_ref[...] + r_ref[...].astype(jnp.float32)
        mean = jnp.mean(y, axis=-1, keepdims=True)
        var = jnp.mean((y - mean) ** 2, axis=-1, keepdims=True)
        o_ref[...] = ((y - mean) * jax.lax.rsqrt(var + eps) * g_ref[...]
                      + beta_ref[...]).astype(o_ref.dtype)


def _emb_add_ln_kernel(w_ref, t_ref, p_ref, g_ref, b_ref, o_ref, *, eps):
    """Fused (word + position + token-type) embedding sum + LayerNorm."""
    y = (w_ref[0].astype(jnp.float32)
         + t_ref[0].astype(jnp.float32)
         + p_ref[...].astype(jnp.float32))
    mean = jnp.mean(y, axis=-1, keepdims=True)
    var = jnp.mean((y - mean) ** 2, axis=-1, keepdims=True)
    o_ref[0] = ((y - mean) * jax.lax.rsqrt(var + eps) * g_ref[...]
                + b_ref[...]).astype(o_ref.dtype)


def _attention_kernel(qkv_ref, o_ref, *, heads_per_group, head_dim):
    """One (batch, head-group) tile per grid step.

    qkv_ref block is (1, S, 3*gw) in head-group-major [Q_g|K_g|V_g] column
    order (produced by the permuted wqkv), so Q/K/V are contiguous static
    slices -- no reshape/transpose of the full hidden slab. The softmax scale
    is already folded into the Q weights. Context is written head-contiguous
    as one lane-dense (S, gw) store.
    """
    S = qkv_ref.shape[1]
    gw = heads_per_group * head_dim

    slab = qkv_ref[0]                       # (S, 3*gw), bf16
    q = slab[:, :gw]
    k = slab[:, gw:2 * gw]
    v = slab[:, 2 * gw:]

    if heads_per_group == 1:
        # pure per-head tile: zero layout ops
        s = jnp.einsum("qd,kd->qk", q, k, preferred_element_type=jnp.float32)
        m = jnp.max(s, axis=-1, keepdims=True)
        p = jnp.exp(s - m)
        p = p * pl.reciprocal(jnp.sum(p, axis=-1, keepdims=True), approx=True)
        ctx = jnp.einsum("qk,kd->qd", p.astype(v.dtype), v,
                         preferred_element_type=jnp.float32)
        o_ref[0] = ctx.astype(o_ref.dtype)
    else:
        qh = q.reshape(S, heads_per_group, head_dim)
        kh = k.reshape(S, heads_per_group, head_dim)
        vh = v.reshape(S, heads_per_group, head_dim)
        # (g, S, S) scores with f32 MXU accumulation
        s = jnp.einsum("qhd,khd->hqk", qh, kh,
                       preferred_element_type=jnp.float32)
        m = jnp.max(s, axis=-1, keepdims=True)
        p = jnp.exp(s - m)
        p = p * pl.reciprocal(jnp.sum(p, axis=-1, keepdims=True), approx=True)
        ctx = jnp.einsum("hqk,khd->qhd", p.astype(vh.dtype), vh,
                         preferred_element_type=jnp.float32)      # (S, g, dh)
        o_ref[0] = ctx.reshape(S, gw).astype(o_ref.dtype)
    # TODO(synk): tokenizer / attention-mask handling from HF is not reproduced;
    # full (all-ones) attention is used instead.


# ----------------------------- kernel wrappers ------------------------------

def linear(x, w, b, *, activation=None, out_dtype=jnp.bfloat16,
           tm_cap=1024, tn_cap=512, tk_cap=512):
    """(M, K) @ (K, N) + bias (+ fused GELU), tiled (M, N, K) grid."""
    M, K = x.shape
    N = w.shape[1]
    tm = _pick_tile(M, tm_cap)
    tn = _pick_tile(N, tn_cap)
    tk = _pick_tile(K, tk_cap)
    grid = (M // tm, N // tn, K // tk)
    return pl.pallas_call(
        functools.partial(_mm_bias_kernel, activation=activation),
        out_shape=jax.ShapeDtypeStruct((M, N), out_dtype),
        grid=grid,
        in_specs=[
            pl.BlockSpec((tm, tk), lambda i, j, k: (i, k)),      # x
            pl.BlockSpec((tk, tn), lambda i, j, k: (k, j)),      # w
            pl.BlockSpec((1, tn), lambda i, j, k: (0, j)),       # bias
        ],
        out_specs=pl.BlockSpec((tm, tn), lambda i, j, k: (i, j)),
        scratch_shapes=[pltpu.VMEM((tm, tn), jnp.float32)],
        compiler_params=pltpu.CompilerParams(
            dimension_semantics=("parallel", "parallel", "arbitrary"),
            vmem_limit_bytes=_vmem_limit_bytes()),
    )(x, w, b.reshape(1, N).astype(jnp.float32))


def matmul_bias_add_layernorm(x, w, b, residual, gamma, beta,
                              *, out_dtype=jnp.bfloat16,
                              tm_cap=512, tk_cap=512):
    """(M, K) @ (K, N) + bias + residual, then LayerNorm over N (full row kept)."""
    M, K = x.shape
    N = w.shape[1]
    tm = _pick_tile(M, tm_cap)
    tk = _pick_tile(K, tk_cap)
    grid = (M // tm, K // tk)
    return pl.pallas_call(
        functools.partial(_mm_bias_add_ln_kernel, eps=_LN_EPS),
        out_shape=jax.ShapeDtypeStruct((M, N), out_dtype),
        grid=grid,
        in_specs=[
            pl.BlockSpec((tm, tk), lambda i, k: (i, k)),         # x
            pl.BlockSpec((tk, N), lambda i, k: (k, 0)),          # w
            pl.BlockSpec((1, N), lambda i, k: (0, 0)),           # bias
            pl.BlockSpec((tm, N), lambda i, k: (i, 0)),          # residual
            pl.BlockSpec((1, N), lambda i, k: (0, 0)),           # gamma
            pl.BlockSpec((1, N), lambda i, k: (0, 0)),           # beta
        ],
        out_specs=pl.BlockSpec((tm, N), lambda i, k: (i, 0)),
        scratch_shapes=[pltpu.VMEM((tm, N), jnp.float32)],
        compiler_params=pltpu.CompilerParams(
            dimension_semantics=("parallel", "arbitrary"),
            vmem_limit_bytes=_vmem_limit_bytes()),
    )(x, w, b.reshape(1, N).astype(jnp.float32), residual,
      gamma.reshape(1, N), beta.reshape(1, N))


def embed_layernorm(word_g, type_g, pos, gamma, beta, *, out_dtype=jnp.bfloat16):
    """Fused (word + pos + type) embedding sum + LayerNorm over hidden dim."""
    B, S, H = word_g.shape
    ts = _pick_tile(S, 512)
    grid = (B, S // ts)
    return pl.pallas_call(
        functools.partial(_emb_add_ln_kernel, eps=_LN_EPS),
        out_shape=jax.ShapeDtypeStruct((B, S, H), out_dtype),
        grid=grid,
        in_specs=[
            pl.BlockSpec((1, ts, H), lambda b, s: (b, s, 0)),    # word gather
            pl.BlockSpec((1, ts, H), lambda b, s: (b, s, 0)),    # type gather
            pl.BlockSpec((ts, H), lambda b, s: (s, 0)),          # position table
            pl.BlockSpec((1, H), lambda b, s: (0, 0)),           # gamma
            pl.BlockSpec((1, H), lambda b, s: (0, 0)),           # beta
        ],
        out_specs=pl.BlockSpec((1, ts, H), lambda b, s: (b, s, 0)),
        compiler_params=pltpu.CompilerParams(
            dimension_semantics=("parallel", "parallel"),
            vmem_limit_bytes=_vmem_limit_bytes()),
    )(word_g, type_g, pos, gamma.reshape(1, H), beta.reshape(1, H))


def attention(qkv, *, num_heads, heads_per_group):
    """qkv: (B, S, 3H) head-group-major fused QKV activations -> (B, S, H)."""
    B, S, H3 = qkv.shape
    H = H3 // 3
    dh = H // num_heads
    gw = heads_per_group * dh
    ngroups = num_heads // heads_per_group
    return pl.pallas_call(
        functools.partial(_attention_kernel, heads_per_group=heads_per_group,
                          head_dim=dh),
        out_shape=jax.ShapeDtypeStruct((B, S, H), qkv.dtype),
        grid=(B, ngroups),
        in_specs=[pl.BlockSpec((1, S, 3 * gw), lambda b, g: (b, 0, g))],
        out_specs=pl.BlockSpec((1, S, gw), lambda b, g: (b, 0, g)),
        compiler_params=pltpu.CompilerParams(
            dimension_semantics=("parallel", "parallel"),
            vmem_limit_bytes=_vmem_limit_bytes()),
    )(qkv)


# ----------------------------- model (glue) ---------------------------------

def encoder_layer(x, p, B, S, num_heads, heads_per_group):
    H = x.shape[-1]
    # fused Q|K|V projection: one (M, H) @ (H, 3H) matmul, head-group-major cols
    qkv = linear(x, p["wqkv"], p["bqkv"])                       # (B*S, 3H)
    ctx = attention(qkv.reshape(B, S, 3 * H),
                    num_heads=num_heads, heads_per_group=heads_per_group)
    ctx = ctx.reshape(B * S, H)
    # output proj + residual + LN fused
    x = matmul_bias_add_layernorm(ctx, p["wo"], p["bo"], x,
                                  p["ln1_g"], p["ln1_b"])
    # FFN: up-proj + GELU fused, down-proj + residual + LN fused
    h = linear(x, p["w1"], p["b1"], activation="gelu")
    x = matmul_bias_add_layernorm(h, p["w2"], p["b2"], x,
                                  p["ln2_g"], p["ln2_b"])
    return x


def nlp_embedder_forward(params, input_ids, token_type_ids, *, num_heads):
    """Equivalent of NLP_embedder.forward on synthetic BERT weights."""
    B, S = input_ids.shape
    H = params["word_emb"].shape[1]
    heads_per_group = _pick_head_group(num_heads, H // num_heads)

    # embedding-table gathers stay in XLA; the 3-way sum + LN is one kernel
    word_g = jnp.take(params["word_emb"], input_ids, axis=0)        # (B,S,H)
    type_g = jnp.take(params["type_emb"], token_type_ids, axis=0)   # (B,S,H)
    x = embed_layernorm(word_g, type_g, params["pos_emb"][:S],
                        params["emb_ln_g"], params["emb_ln_b"])
    x = x.reshape(B * S, H)

    for layer in params["layers"]:
        x = encoder_layer(x, layer, B, S, num_heads, heads_per_group)

    last_hidden_state = x.reshape(B, S, H)
    cls = last_hidden_state[:, 0]                    # self.lasthiddenstate = 0
    # self.fc1: a (B, H) @ (H, num_classes) matmul is pure launch overhead as a
    # Pallas call (4-wide masked stores) -> plain JAX per perf review.
    logits = cls.astype(jnp.float32) @ params["fc1_w"] + params["fc1_b"]
    return logits


# ----------------------------- parameter init -------------------------------

def init_params(key, *, vocab=100, max_pos=16, type_vocab=2, hidden=32,
                num_layers=2, intermediate=64, num_classes=4, num_heads=2):
    def nrm(k, shape):
        return 0.02 * jax.random.normal(k, shape)

    dh = hidden // num_heads
    heads_per_group = _pick_head_group(num_heads, dh)
    qkv_perm = _group_major_perm(hidden, num_heads, heads_per_group)
    scale = 1.0 / math.sqrt(dh)

    keys = jax.random.split(key, 4 + num_layers)
    params = {
        "word_emb": nrm(keys[0], (vocab, hidden)).astype(jnp.float32),
        "pos_emb": nrm(keys[1], (max_pos, hidden)).astype(jnp.float32),
        "type_emb": nrm(keys[2], (type_vocab, hidden)).astype(jnp.float32),
        "emb_ln_g": jnp.ones((hidden,), jnp.float32),
        "emb_ln_b": jnp.zeros((hidden,), jnp.float32),
        "layers": [],
    }
    for li in range(num_layers):
        lk = jax.random.split(keys[4 + li], 4)
        # fused QKV weight: fold the 1/sqrt(dh) softmax scale into the Q
        # columns, then permute columns into head-group-major [Q_g|K_g|V_g]
        # layout (one-time host-side transform; attention kernel then needs
        # no in-kernel scale and no head-split transposes).
        wqkv = nrm(lk[0], (hidden, 3 * hidden))
        bqkv = jnp.zeros((3 * hidden,), jnp.float32)
        wqkv = wqkv.at[:, :hidden].multiply(scale)
        bqkv = bqkv.at[:hidden].multiply(scale)
        wqkv = wqkv[:, qkv_perm].astype(jnp.bfloat16)
        bqkv = bqkv[qkv_perm]
        params["layers"].append({
            "wqkv": wqkv,
            "bqkv": bqkv,
            "wo": nrm(lk[1], (hidden, hidden)).astype(jnp.bfloat16),
            "bo": jnp.zeros((hidden,), jnp.float32),
            "ln1_g": jnp.ones((hidden,), jnp.float32),
            "ln1_b": jnp.zeros((hidden,), jnp.float32),
            "w1": nrm(lk[2], (hidden, intermediate)).astype(jnp.bfloat16),
            "b1": jnp.zeros((intermediate,), jnp.float32),
            "w2": nrm(lk[3], (intermediate, hidden)).astype(jnp.bfloat16),
            "b2": jnp.zeros((hidden,), jnp.float32),
            "ln2_g": jnp.ones((hidden,), jnp.float32),
            "ln2_b": jnp.zeros((hidden,), jnp.float32),
        })
    fck = jax.random.split(keys[3], 2)
    params["fc1_w"] = nrm(fck[0], (hidden, num_classes)).astype(jnp.float32)
    params["fc1_b"] = jnp.zeros((num_classes,), jnp.float32)
    return params


if __name__ == "__main__":
    B, S = 2, 8
    NUM_HEADS = 2          # static model config (kept OUT of the jit pytree)
    NUM_CLASSES = 4

    key = jax.random.PRNGKey(0)
    pkey, ikey = jax.random.split(key)
    params = init_params(pkey, num_classes=NUM_CLASSES, num_heads=NUM_HEADS)

    input_ids = jax.random.randint(ikey, (B, S), 0, 100, dtype=jnp.int32)
    token_type_ids = jnp.zeros((B, S), dtype=jnp.int32)

    fwd = jax.jit(functools.partial(nlp_embedder_forward, num_heads=NUM_HEADS))
    logits = fwd(params, input_ids, token_type_ids)
    jax.block_until_ready(logits)
    assert logits.shape == (B, NUM_CLASSES)
    print("KERNEL_OK")
</pallas_src>

<mosaic_0001>
module attributes {stable_mosaic.version = 11 : i64} {
  func.func @_attention_kernel(%arg0: i32, %arg1: i32, %arg2: memref<1x8x96xbf16, #tpu.memory_space<vmem>>, %arg3: memref<1x8x32xbf16, #tpu.memory_space<vmem>>) attributes {dimension_semantics = [#tpu.dimension_semantics<parallel>, #tpu.dimension_semantics<parallel>], iteration_bounds = array<i64: 2, 1>, scalar_prefetch = 0 : i64, scratch_operands = 0 : i64, tpu.core_type = #tpu.core_type<tc>, window_params = [{transform_indices = @transform_0, window_bounds = array<i64: 1, 8, 96>}, {transform_indices = @transform_1, window_bounds = array<i64: 1, 8, 32>}]} {
    %c0 = arith.constant 0 : index
    %c0_0 = arith.constant 0 : index
    %c0_1 = arith.constant 0 : index
    %0 = vector.load %arg2[%c0, %c0_0, %c0_1] : memref<1x8x96xbf16, #tpu.memory_space<vmem>>, vector<1x8x96xbf16>
    %1 = vector.shape_cast %0 : vector<1x8x96xbf16> to vector<8x96xbf16>
    %2 = vector.extract_strided_slice %1 {offsets = [0, 0], sizes = [8, 32], strides = [1, 1]} : vector<8x96xbf16> to vector<8x32xbf16>
    %3 = vector.extract_strided_slice %1 {offsets = [0, 32], sizes = [8, 32], strides = [1, 1]} : vector<8x96xbf16> to vector<8x32xbf16>
    %4 = vector.extract_strided_slice %1 {offsets = [0, 64], sizes = [8, 32], strides = [1, 1]} : vector<8x96xbf16> to vector<8x32xbf16>
    %5 = vector.shape_cast %2 : vector<8x32xbf16> to vector<8x2x16xbf16>
    %6 = vector.shape_cast %3 : vector<8x32xbf16> to vector<8x2x16xbf16>
    %7 = vector.shape_cast %4 : vector<8x32xbf16> to vector<8x2x16xbf16>
    "tpu.trace_start"() <{level = 10 : i32, message = "qhd,khd->hqk"}> : () -> ()
    %cst = arith.constant dense<0.000000e+00> : vector<2x8x8xf32>
    %8 = tpu.matmul %5, %6, %cst {dimension_numbers = #tpu.dot_dimension_numbers<[2], [2], [0], [0], [0, 1, 0, 0, 1, 0], [1], [1]>} : vector<8x2x16xbf16>, vector<8x2x16xbf16>, vector<2x8x8xf32> -> vector<2x8x8xf32>
    "tpu.trace_stop"() : () -> ()
    %cst_2 = arith.constant dense<0xFF800000> : vector<2x8xf32>
    %9 = vector.multi_reduction <maximumf>, %8, %cst_2 [2] : vector<2x8x8xf32> to vector<2x8xf32>
    %10 = vector.shape_cast %9 : vector<2x8xf32> to vector<2x8x1xf32>
    %11 = vector.broadcast %10 : vector<2x8x1xf32> to vector<2x8x8xf32>
    %12 = arith.subf %8, %11 : vector<2x8x8xf32>
    %13 = math.exp %12 : vector<2x8x8xf32>
    %cst_3 = arith.constant dense<0.000000e+00> : vector<2x8xf32>
    %14 = vector.multi_reduction <add>, %13, %cst_3 [2] : vector<2x8x8xf32> to vector<2x8xf32>
    %15 = vector.shape_cast %14 : vector<2x8xf32> to vector<2x8x1xf32>
    %16 = tpu.reciprocal %15 {approx = true} : vector<2x8x1xf32> -> vector<2x8x1xf32>
    %17 = vector.broadcast %16 : vector<2x8x1xf32> to vector<2x8x8xf32>
    %18 = arith.mulf %13, %17 : vector<2x8x8xf32>
    %19 = arith.truncf %18 : vector<2x8x8xf32> to vector<2x8x8xbf16>
    "tpu.trace_start"() <{level = 10 : i32, message = "hqk,khd->qhd"}> : () -> ()
    %cst_4 = arith.constant dense<0.000000e+00> : vector<2x16x8xf32>
    %20 = tpu.matmul %7, %19, %cst_4 {dimension_numbers = #tpu.dot_dimension_numbers<[0], [2], [2], [1], [0, 1, 0, 2, 1, 1], [1], [0]>} : vector<8x2x16xbf16>, vector<2x8x8xbf16>, vector<2x16x8xf32> -> vector<2x16x8xf32>
    %21 = tpu.transpose %20, [2, 0, 1] : vector<2x16x8xf32> -> vector<8x2x16xf32>
    "tpu.trace_stop"() : () -> ()
    %22 = vector.shape_cast %21 : vector<8x2x16xf32> to vector<8x32xf32>
    %23 = arith.truncf %22 : vector<8x32xf32> to vector<8x32xbf16>
    %c0_5 = arith.constant 0 : index
    %c0_6 = arith.constant 0 : index
    %c0_7 = arith.constant 0 : index
    %24 = vector.load %arg3[%c0_5, %c0_6, %c0_7] : memref<1x8x32xbf16, #tpu.memory_space<vmem>>, vector<1x8x32xbf16>
    %25 = vector.shape_cast %24 : vector<1x8x32xbf16> to vector<8x32xbf16>
    %26 = vector.shape_cast %23 : vector<8x32xbf16> to vector<1x8x32xbf16>
    tpu.vector_store %arg3[%c0_5, %c0_6, %c0_7], %26 {strides = array<i32>} : memref<1x8x32xbf16, #tpu.memory_space<vmem>>, vector<1x8x32xbf16>,
    return
  }
  func.func @transform_0(%arg0: i32, %arg1: i32) -> (i32, i32, i32) {
    %c0_i32 = arith.constant 0 : i32
    %c0_i32_0 = arith.constant 0 : i32
    return %arg0, %c0_i32, %arg1 : i32, i32, i32
  }
  func.func @transform_1(%arg0: i32, %arg1: i32) -> (i32, i32, i32) {
    %c0_i32 = arith.constant 0 : i32
    %c0_i32_0 = arith.constant 0 : i32
    return %arg0, %c0_i32, %arg1 : i32, i32, i32
  }
}

module attributes {stable_mosaic.version = 11 : i64} {
  func.func @_emb_add_ln_kernel(%arg0: i32, %arg1: i32, %arg2: memref<1x8x32xf32, #tpu.memory_space<vmem>>, %arg3: memref<1x8x32xf32, #tpu.memory_space<vmem>>, %arg4: memref<8x32xf32, #tpu.memory_space<vmem>>, %arg5: memref<1x32xf32, #tpu.memory_space<vmem>>, %arg6: memref<1x32xf32, #tpu.memory_space<vmem>>, %arg7: memref<1x8x32xbf16, #tpu.memory_space<vmem>>) attributes {dimension_semantics = [#tpu.dimension_semantics<parallel>, #tpu.dimension_semantics<parallel>], iteration_bounds = array<i64: 2, 1>, scalar_prefetch = 0 : i64, scratch_operands = 0 : i64, tpu.core_type = #tpu.core_type<tc>, window_params = [{transform_indices = @transform_0, window_bounds = array<i64: 1, 8, 32>}, {transform_indices = @transform_1, window_bounds = array<i64: 1, 8, 32>}, {transform_indices = @transform_2, window_bounds = array<i64: 8, 32>}, {pipeline_mode = #tpu.pipeline_mode<synchronous>, transform_indices = @transform_3, window_bounds = array<i64: 1, 32>}, {pipeline_mode = #tpu.pipeline_mode<synchronous>, transform_indices = @transform_4, window_bounds = array<i64: 1, 32>}, {transform_indices = @transform_5, window_bounds = array<i64: 1, 8, 32>}]} {
    %c0 = arith.constant 0 : index
    %c0_0 = arith.constant 0 : index
    %c0_1 = arith.constant 0 : index
    %0 = vector.load %arg2[%c0, %c0_0, %c0_1] : memref<1x8x32xf32, #tpu.memory_space<vmem>>, vector<1x8x32xf32>
    %1 = vector.shape_cast %0 : vector<1x8x32xf32> to vector<8x32xf32>
    %c0_2 = arith.constant 0 : index
    %c0_3 = arith.constant 0 : index
    %c0_4 = arith.constant 0 : index
    %2 = vector.load %arg3[%c0_2, %c0_3, %c0_4] : memref<1x8x32xf32, #tpu.memory_space<vmem>>, vector<1x8x32xf32>
    %3 = vector.shape_cast %2 : vector<1x8x32xf32> to vector<8x32xf32>
    %4 = arith.addf %1, %3 : vector<8x32xf32>
    %c0_5 = arith.constant 0 : index
    %c0_6 = arith.constant 0 : index
    %5 = vector.load %arg4[%c0_5, %c0_6] : memref<8x32xf32, #tpu.memory_space<vmem>>, vector<8x32xf32>
    %6 = arith.addf %4, %5 : vector<8x32xf32>
    %cst = arith.constant dense<0.000000e+00> : vector<8xf32>
    %7 = vector.multi_reduction <add>, %6, %cst [1] : vector<8x32xf32> to vector<8xf32>
    %8 = vector.shape_cast %7 : vector<8xf32> to vector<8x1xf32>
    %cst_7 = arith.constant 3.200000e+01 : f32
    %9 = vector.broadcast %cst_7 : f32 to vector<8x1xf32>
    %10 = arith.divf %8, %9 : vector<8x1xf32>
    %11 = vector.broadcast %10 : vector<8x1xf32> to vector<8x32xf32>
    %12 = arith.subf %6, %11 : vector<8x32xf32>
    %13 = arith.mulf %12, %12 : vector<8x32xf32>
    %cst_8 = arith.constant dense<0.000000e+00> : vector<8xf32>
    %14 = vector.multi_reduction <add>, %13, %cst_8 [1] : vector<8x32xf32> to vector<8xf32>
    %15 = vector.shape_cast %14 : vector<8xf32> to vector<8x1xf32>
    %cst_9 = arith.constant 3.200000e+01 : f32
    %16 = vector.broadcast %cst_9 : f32 to vector<8x1xf32>
    %17 = arith.divf %15, %16 : vector<8x1xf32>
    %18 = vector.broadcast %10 : vector<8x1xf32> to vector<8x32xf32>
    %19 = arith.subf %6, %18 : vector<8x32xf32>
    %cst_10 = arith.constant 9.99999996E-13 : f32
    %20 = vector.broadcast %cst_10 : f32 to vector<8x1xf32>
    %21 = arith.addf %17, %20 : vector<8x1xf32>
    %22 = math.rsqrt %21 : vector<8x1xf32>
    %23 = vector.broadcast %22 : vector<8x1xf32> to vector<8x32xf32>
    %24 = arith.mulf %19, %23 : vector<8x32xf32>
    %c0_11 = arith.constant 0 : index
    %c0_12 = arith.constant 0 : index
    %25 = vector.load %arg5[%c0_11, %c0_12] : memref<1x32xf32, #tpu.memory_space<vmem>>, vector<1x32xf32>
    %26 = vector.broadcast %25 : vector<1x32xf32> to vector<8x32xf32>
    %27 = arith.mulf %24, %26 : vector<8x32xf32>
    %c0_13 = arith.constant 0 : index
    %c0_14 = arith.constant 0 : index
    %28 = vector.load %arg6[%c0_13, %c0_14] : memref<1x32xf32, #tpu.memory_space<vmem>>, vector<1x32xf32>
    %29 = vector.broadcast %28 : vector<1x32xf32> to vector<8x32xf32>
    %30 = arith.addf %27, %29 : vector<8x32xf32>
    %31 = arith.truncf %30 : vector<8x32xf32> to vector<8x32xbf16>
    %c0_15 = arith.constant 0 : index
    %c0_16 = arith.constant 0 : index
    %c0_17 = arith.constant 0 : index
    %32 = vector.load %arg7[%c0_15, %c0_16, %c0_17] : memref<1x8x32xbf16, #tpu.memory_space<vmem>>, vector<1x8x32xbf16>
    %33 = vector.shape_cast %32 : vector<1x8x32xbf16> to vector<8x32xbf16>
    %34 = vector.shape_cast %31 : vector<8x32xbf16> to vector<1x8x32xbf16>
    tpu.vector_store %arg7[%c0_15, %c0_16, %c0_17], %34 {strides = array<i32>} : memref<1x8x32xbf16, #tpu.memory_space<vmem>>, vector<1x8x32xbf16>,
    return
  }
  func.func @transform_0(%arg0: i32, %arg1: i32) -> (i32, i32, i32) {
    %c0_i32 = arith.constant 0 : i32
    %c0_i32_0 = arith.constant 0 : i32
    return %arg0, %arg1, %c0_i32 : i32, i32, i32
  }
  func.func @transform_1(%arg0: i32, %arg1: i32) -> (i32, i32, i32) {
    %c0_i32 = arith.constant 0 : i32
    %c0_i32_0 = arith.constant 0 : i32
    return %arg0, %arg1, %c0_i32 : i32, i32, i32
  }
  func.func @transform_2(%arg0: i32, %arg1: i32) -> (i32, i32) {
    %c0_i32 = arith.constant 0 : i32
    %c0_i32_0 = arith.constant 0 : i32
    return %arg1, %c0_i32 : i32, i32
  }
  func.func @transform_3(%arg0: i32, %arg1: i32) -> (i32, i32) {
    %c0_i32 = arith.constant 0 : i32
    %c0_i32_0 = arith.constant 0 : i32
    %c0_i32_1 = arith.constant 0 : i32
    return %c0_i32, %c0_i32_0 : i32, i32
  }
  func.func @transform_4(%arg0: i32, %arg1: i32) -> (i32, i32) {
    %c0_i32 = arith.constant 0 : i32
    %c0_i32_0 = arith.constant 0 : i32
    %c0_i32_1 = arith.constant 0 : i32
    return %c0_i32, %c0_i32_0 : i32, i32
  }
  func.func @transform_5(%arg0: i32, %arg1: i32) -> (i32, i32, i32) {
    %c0_i32 = arith.constant 0 : i32
    %c0_i32_0 = arith.constant 0 : i32
    return %arg0, %arg1, %c0_i32 : i32, i32, i32
  }
}

module attributes {stable_mosaic.version = 11 : i64} {
  func.func @_mm_bias_add_ln_kernel(%arg0: i32, %arg1: i32, %arg2: memref<16x32xbf16, #tpu.memory_space<vmem>>, %arg3: memref<32x32xbf16, #tpu.memory_space<vmem>>, %arg4: memref<1x32xf32, #tpu.memory_space<vmem>>, %arg5: memref<16x32xbf16, #tpu.memory_space<vmem>>, %arg6: memref<1x32xf32, #tpu.memory_space<vmem>>, %arg7: memref<1x32xf32, #tpu.memory_space<vmem>>, %arg8: memref<16x32xbf16, #tpu.memory_space<vmem>>, %arg9: memref<16x32xf32, #tpu.memory_space<vmem>>) attributes {dimension_semantics = [#tpu.dimension_semantics<parallel>, #tpu.dimension_semantics<arbitrary>], iteration_bounds = array<i64: 1, 1>, scalar_prefetch = 0 : i64, scratch_operands = 1 : i64, tpu.core_type = #tpu.core_type<tc>, window_params = [{transform_indices = @transform_0, window_bounds = array<i64: 16, 32>}, {transform_indices = @transform_1, window_bounds = array<i64: 32, 32>}, {pipeline_mode = #tpu.pipeline_mode<synchronous>, transform_indices = @transform_2, window_bounds = array<i64: 1, 32>}, {transform_indices = @transform_3, window_bounds = array<i64: 16, 32>}, {pipeline_mode = #tpu.pipeline_mode<synchronous>, transform_indices = @transform_4, window_bounds = array<i64: 1, 32>}, {pipeline_mode = #tpu.pipeline_mode<synchronous>, transform_indices = @transform_5, window_bounds = array<i64: 1, 32>}, {transform_indices = @transform_6, window_bounds = array<i64: 16, 32>}]} {
    %c0_i32 = arith.constant 0 : i32
    %0 = arith.cmpi eq, %arg1, %c0_i32 : i32
    %1 = arith.extui %0 : i1 to i32
    %c0_i32_0 = arith.constant 0 : i32
    %2 = arith.cmpi ne, %1, %c0_i32_0 : i32
    scf.if %2 {
      %cst_10 = arith.constant 0.000000e+00 : f32
      %12 = vector.broadcast %cst_10 : f32 to vector<16x32xf32>
      %c0_11 = arith.constant 0 : index
      %c0_12 = arith.constant 0 : index
      %13 = vector.load %arg9[%c0_11, %c0_12] : memref<16x32xf32, #tpu.memory_space<vmem>>, vector<16x32xf32>
      tpu.vector_store %arg9[%c0_11, %c0_12], %12 {strides = array<i32>} : memref<16x32xf32, #tpu.memory_space<vmem>>, vector<16x32xf32>,
    } else {
    }
    %c0 = arith.constant 0 : index
    %c0_1 = arith.constant 0 : index
    %3 = vector.load %arg9[%c0, %c0_1] : memref<16x32xf32, #tpu.memory_space<vmem>>, vector<16x32xf32>
    %c0_2 = arith.constant 0 : index
    %c0_3 = arith.constant 0 : index
    %4 = vector.load %arg2[%c0_2, %c0_3] : memref<16x32xbf16, #tpu.memory_space<vmem>>, vector<16x32xbf16>
    %c0_4 = arith.constant 0 : index
    %c0_5 = arith.constant 0 : index
    %5 = vector.load %arg3[%c0_4, %c0_5] : memref<32x32xbf16, #tpu.memory_space<vmem>>, vector<32x32xbf16>
    %cst = arith.constant dense<0.000000e+00> : vector<16x32xf32>
    %6 = tpu.matmul %4, %5, %cst {dimension_numbers = #tpu.dot_dimension_numbers<[1], [0], [0], [1], [0, 0, 1, 1], [], []>} : vector<16x32xbf16>, vector<32x32xbf16>, vector<16x32xf32> -> vector<16x32xf32>
    %7 = arith.addf %3, %6 : vector<16x32xf32>
    %c0_6 = arith.constant 0 : index
    %c0_7 = arith.constant 0 : index
    %8 = vector.load %arg9[%c0_6, %c0_7] : memref<16x32xf32, #tpu.memory_space<vmem>>, vector<16x32xf32>
    tpu.vector_store %arg9[%c0_6, %c0_7], %7 {strides = array<i32>} : memref<16x32xf32, #tpu.memory_space<vmem>>, vector<16x32xf32>,
    %c0_i32_8 = arith.constant 0 : i32
    %9 = arith.cmpi eq, %arg1, %c0_i32_8 : i32
    %10 = arith.extui %9 : i1 to i32
    %c0_i32_9 = arith.constant 0 : i32
    %11 = arith.cmpi ne, %10, %c0_i32_9 : i32
    scf.if %11 {
      %c0_10 = arith.constant 0 : index
      %c0_11 = arith.constant 0 : index
      %12 = vector.load %arg9[%c0_10, %c0_11] : memref<16x32xf32, #tpu.memory_space<vmem>>, vector<16x32xf32>
      %c0_12 = arith.constant 0 : index
      %c0_13 = arith.constant 0 : index
      %13 = vector.load %arg4[%c0_12, %c0_13] : memref<1x32xf32, #tpu.memory_space<vmem>>, vector<1x32xf32>
      %14 = vector.broadcast %13 : vector<1x32xf32> to vector<16x32xf32>
      %15 = arith.addf %12, %14 : vector<16x32xf32>
      %c0_14 = arith.constant 0 : index
      %c0_15 = arith.constant 0 : index
      %16 = vector.load %arg5[%c0_14, %c0_15] : memref<16x32xbf16, #tpu.memory_space<vmem>>, vector<16x32xbf16>
      %17 = arith.extf %16 : vector<16x32xbf16> to vector<16x32xf32>
      %18 = arith.addf %15, %17 : vector<16x32xf32>
      %cst_16 = arith.constant dense<0.000000e+00> : vector<16xf32>
      %19 = vector.multi_reduction <add>, %18, %cst_16 [1] : vector<16x32xf32> to vector<16xf32>
      %20 = vector.shape_cast %19 : vector<16xf32> to vector<16x1xf32>
      %cst_17 = arith.constant 3.200000e+01 : f32
      %21 = vector.broadcast %cst_17 : f32 to vector<16x1xf32>
      %22 = arith.divf %20, %21 : vector<16x1xf32>
      %23 = vector.broadcast %22 : vector<16x1xf32> to vector<16x32xf32>
      %24 = arith.subf %18, %23 : vector<16x32xf32>
      %25 = arith.mulf %24, %24 : vector<16x32xf32>
      %cst_18 = arith.constant dense<0.000000e+00> : vector<16xf32>
      %26 = vector.multi_reduction <add>, %25, %cst_18 [1] : vector<16x32xf32> to vector<16xf32>
      %27 = vector.shape_cast %26 : vector<16xf32> to vector<16x1xf32>
      %cst_19 = arith.constant 3.200000e+01 : f32
      %28 = vector.broadcast %cst_19 : f32 to vector<16x1xf32>
      %29 = arith.divf %27, %28 : vector<16x1xf32>
      %30 = vector.broadcast %22 : vector<16x1xf32> to vector<16x32xf32>
      %31 = arith.subf %18, %30 : vector<16x32xf32>
      %cst_20 = arith.constant 9.99999996E-13 : f32
      %32 = vector.broadcast %cst_20 : f32 to vector<16x1xf32>
      %33 = arith.addf %29, %32 : vector<16x1xf32>
      %34 = math.rsqrt %33 : vector<16x1xf32>
      %35 = vector.broadcast %34 : vector<16x1xf32> to vector<16x32xf32>
      %36 = arith.mulf %31, %35 : vector<16x32xf32>
      %c0_21 = arith.constant 0 : index
      %c0_22 = arith.constant 0 : index
      %37 = vector.load %arg6[%c0_21, %c0_22] : memref<1x32xf32, #tpu.memory_space<vmem>>, vector<1x32xf32>
      %38 = vector.broadcast %37 : vector<1x32xf32> to vector<16x32xf32>
      %39 = arith.mulf %36, %38 : vector<16x32xf32>
      %c0_23 = arith.constant 0 : index
      %c0_24 = arith.constant 0 : index
      %40 = vector.load %arg7[%c0_23, %c0_24] : memref<1x32xf32, #tpu.memory_space<vmem>>, vector<1x32xf32>
      %41 = vector.broadcast %40 : vector<1x32xf32> to vector<16x32xf32>
      %42 = arith.addf %39, %41 : vector<16x32xf32>
      %43 = arith.truncf %42 : vector<16x32xf32> to vector<16x32xbf16>
      %c0_25 = arith.constant 0 : index
      %c0_26 = arith.constant 0 : index
      %44 = vector.load %arg8[%c0_25, %c0_26] : memref<16x32xbf16, #tpu.memory_space<vmem>>, vector<16x32xbf16>
      tpu.vector_store %arg8[%c0_25, %c0_26], %43 {strides = array<i32>} : memref<16x32xbf16, #tpu.memory_space<vmem>>, vector<16x32xbf16>,
    } else {
    }
    return
  }
  func.func @transform_0(%arg0: i32, %arg1: i32) -> (i32, i32) {
    %c0_i32 = arith.constant 0 : i32
    return %arg0, %arg1 : i32, i32
  }
  func.func @transform_1(%arg0: i32, %arg1: i32) -> (i32, i32) {
    %c0_i32 = arith.constant 0 : i32
    %c0_i32_0 = arith.constant 0 : i32
    return %arg1, %c0_i32 : i32, i32
  }
  func.func @transform_2(%arg0: i32, %arg1: i32) -> (i32, i32) {
    %c0_i32 = arith.constant 0 : i32
    %c0_i32_0 = arith.constant 0 : i32
    %c0_i32_1 = arith.constant 0 : i32
    return %c0_i32, %c0_i32_0 : i32, i32
  }
  func.func @transform_3(%arg0: i32, %arg1: i32) -> (i32, i32) {
    %c0_i32 = arith.constant 0 : i32
    %c0_i32_0 = arith.constant 0 : i32
    return %arg0, %c0_i32 : i32, i32
  }
  func.func @transform_4(%arg0: i32, %arg1: i32) -> (i32, i32) {
    %c0_i32 = arith.constant 0 : i32
    %c0_i32_0 = arith.constant 0 : i32
    %c0_i32_1 = arith.constant 0 : i32
    return %c0_i32, %c0_i32_0 : i32, i32
  }
  func.func @transform_5(%arg0: i32, %arg1: i32) -> (i32, i32) {
    %c0_i32 = arith.constant 0 : i32
    %c0_i32_0 = arith.constant 0 : i32
    %c0_i32_1 = arith.constant 0 : i32
    return %c0_i32, %c0_i32_0 : i32, i32
  }
  func.func @transform_6(%arg0: i32, %arg1: i32) -> (i32, i32) {
    %c0_i32 = arith.constant 0 : i32
    %c0_i32_0 = arith.constant 0 : i32
    return %arg0, %c0_i32 : i32, i32
  }
}

module attributes {stable_mosaic.version = 11 : i64} {
  func.func @_mm_bias_kernel(%arg0: i32, %arg1: i32, %arg2: i32, %arg3: memref<16x32xbf16, #tpu.memory_space<vmem>>, %arg4: memref<32x96xbf16, #tpu.memory_space<vmem>>, %arg5: memref<1x96xf32, #tpu.memory_space<vmem>>, %arg6: memref<16x96xbf16, #tpu.memory_space<vmem>>, %arg7: memref<16x96xf32, #tpu.memory_space<vmem>>) attributes {dimension_semantics = [#tpu.dimension_semantics<parallel>, #tpu.dimension_semantics<parallel>, #tpu.dimension_semantics<arbitrary>], iteration_bounds = array<i64: 1, 1, 1>, scalar_prefetch = 0 : i64, scratch_operands = 1 : i64, tpu.core_type = #tpu.core_type<tc>, window_params = [{transform_indices = @transform_0, window_bounds = array<i64: 16, 32>}, {transform_indices = @transform_1, window_bounds = array<i64: 32, 96>}, {transform_indices = @transform_2, window_bounds = array<i64: 1, 96>}, {transform_indices = @transform_3, window_bounds = array<i64: 16, 96>}]} {
    %c0_i32 = arith.constant 0 : i32
    %0 = arith.cmpi eq, %arg2, %c0_i32 : i32
    %1 = arith.extui %0 : i1 to i32
    %c0_i32_0 = arith.constant 0 : i32
    %2 = arith.cmpi ne, %1, %c0_i32_0 : i32
    scf.if %2 {
      %cst_10 = arith.constant 0.000000e+00 : f32
      %12 = vector.broadcast %cst_10 : f32 to vector<16x96xf32>
      %c0_11 = arith.constant 0 : index
      %c0_12 = arith.constant 0 : index
      %13 = vector.load %arg7[%c0_11, %c0_12] : memref<16x96xf32, #tpu.memory_space<vmem>>, vector<16x96xf32>
      tpu.vector_store %arg7[%c0_11, %c0_12], %12 {strides = array<i32>} : memref<16x96xf32, #tpu.memory_space<vmem>>, vector<16x96xf32>,
    } else {
    }
    %c0 = arith.constant 0 : index
    %c0_1 = arith.constant 0 : index
    %3 = vector.load %arg7[%c0, %c0_1] : memref<16x96xf32, #tpu.memory_space<vmem>>, vector<16x96xf32>
    %c0_2 = arith.constant 0 : index
    %c0_3 = arith.constant 0 : index
    %4 = vector.load %arg3[%c0_2, %c0_3] : memref<16x32xbf16, #tpu.memory_space<vmem>>, vector<16x32xbf16>
    %c0_4 = arith.constant 0 : index
    %c0_5 = arith.constant 0 : index
    %5 = vector.load %arg4[%c0_4, %c0_5] : memref<32x96xbf16, #tpu.memory_space<vmem>>, vector<32x96xbf16>
    %cst = arith.constant dense<0.000000e+00> : vector<16x96xf32>
    %6 = tpu.matmul %4, %5, %cst {dimension_numbers = #tpu.dot_dimension_numbers<[1], [0], [0], [1], [0, 0, 1, 1], [], []>} : vector<16x32xbf16>, vector<32x96xbf16>, vector<16x96xf32> -> vector<16x96xf32>
    %7 = arith.addf %3, %6 : vector<16x96xf32>
    %c0_6 = arith.constant 0 : index
    %c0_7 = arith.constant 0 : index
    %8 = vector.load %arg7[%c0_6, %c0_7] : memref<16x96xf32, #tpu.memory_space<vmem>>, vector<16x96xf32>
    tpu.vector_store %arg7[%c0_6, %c0_7], %7 {strides = array<i32>} : memref<16x96xf32, #tpu.memory_space<vmem>>, vector<16x96xf32>,
    %c0_i32_8 = arith.constant 0 : i32
    %9 = arith.cmpi eq, %arg2, %c0_i32_8 : i32
    %10 = arith.extui %9 : i1 to i32
    %c0_i32_9 = arith.constant 0 : i32
    %11 = arith.cmpi ne, %10, %c0_i32_9 : i32
    scf.if %11 {
      %c0_10 = arith.constant 0 : index
      %c0_11 = arith.constant 0 : index
      %12 = vector.load %arg7[%c0_10, %c0_11] : memref<16x96xf32, #tpu.memory_space<vmem>>, vector<16x96xf32>
      %c0_12 = arith.constant 0 : index
      %c0_13 = arith.constant 0 : index
      %13 = vector.load %arg5[%c0_12, %c0_13] : memref<1x96xf32, #tpu.memory_space<vmem>>, vector<1x96xf32>
      %14 = vector.broadcast %13 : vector<1x96xf32> to vector<16x96xf32>
      %15 = arith.addf %12, %14 : vector<16x96xf32>
      %16 = arith.truncf %15 : vector<16x96xf32> to vector<16x96xbf16>
      %c0_14 = arith.constant 0 : index
      %c0_15 = arith.constant 0 : index
      %17 = vector.load %arg6[%c0_14, %c0_15] : memref<16x96xbf16, #tpu.memory_space<vmem>>, vector<16x96xbf16>
      tpu.vector_store %arg6[%c0_14, %c0_15], %16 {strides = array<i32>} : memref<16x96xbf16, #tpu.memory_space<vmem>>, vector<16x96xbf16>,
    } else {
    }
    return
  }
  func.func @transform_0(%arg0: i32, %arg1: i32, %arg2: i32) -> (i32, i32) {
    %c0_i32 = arith.constant 0 : i32
    return %arg0, %arg2 : i32, i32
  }
  func.func @transform_1(%arg0: i32, %arg1: i32, %arg2: i32) -> (i32, i32) {
    %c0_i32 = arith.constant 0 : i32
    return %arg2, %arg1 : i32, i32
  }
  func.func @transform_2(%arg0: i32, %arg1: i32, %arg2: i32) -> (i32, i32) {
    %c0_i32 = arith.constant 0 : i32
    %c0_i32_0 = arith.constant 0 : i32
    return %c0_i32, %arg1 : i32, i32
  }
  func.func @transform_3(%arg0: i32, %arg1: i32, %arg2: i32) -> (i32, i32) {
    %c0_i32 = arith.constant 0 : i32
    return %arg0, %arg1 : i32, i32
  }
}

module attributes {stable_mosaic.version = 11 : i64} {
  func.func @_mm_bias_kernel(%arg0: i32, %arg1: i32, %arg2: i32, %arg3: memref<16x32xbf16, #tpu.memory_space<vmem>>, %arg4: memref<32x64xbf16, #tpu.memory_space<vmem>>, %arg5: memref<1x64xf32, #tpu.memory_space<vmem>>, %arg6: memref<16x64xbf16, #tpu.memory_space<vmem>>, %arg7: memref<16x64xf32, #tpu.memory_space<vmem>>) attributes {dimension_semantics = [#tpu.dimension_semantics<parallel>, #tpu.dimension_semantics<parallel>, #tpu.dimension_semantics<arbitrary>], iteration_bounds = array<i64: 1, 1, 1>, scalar_prefetch = 0 : i64, scratch_operands = 1 : i64, tpu.core_type = #tpu.core_type<tc>, window_params = [{transform_indices = @transform_0, window_bounds = array<i64: 16, 32>}, {transform_indices = @transform_1, window_bounds = array<i64: 32, 64>}, {transform_indices = @transform_2, window_bounds = array<i64: 1, 64>}, {transform_indices = @transform_3, window_bounds = array<i64: 16, 64>}]} {
    %c0_i32 = arith.constant 0 : i32
    %0 = arith.cmpi eq, %arg2, %c0_i32 : i32
    %1 = arith.extui %0 : i1 to i32
    %c0_i32_0 = arith.constant 0 : i32
    %2 = arith.cmpi ne, %1, %c0_i32_0 : i32
    scf.if %2 {
      %cst_10 = arith.constant 0.000000e+00 : f32
      %12 = vector.broadcast %cst_10 : f32 to vector<16x64xf32>
      %c0_11 = arith.constant 0 : index
      %c0_12 = arith.constant 0 : index
      %13 = vector.load %arg7[%c0_11, %c0_12] : memref<16x64xf32, #tpu.memory_space<vmem>>, vector<16x64xf32>
      tpu.vector_store %arg7[%c0_11, %c0_12], %12 {strides = array<i32>} : memref<16x64xf32, #tpu.memory_space<vmem>>, vector<16x64xf32>,
    } else {
    }
    %c0 = arith.constant 0 : index
    %c0_1 = arith.constant 0 : index
    %3 = vector.load %arg7[%c0, %c0_1] : memref<16x64xf32, #tpu.memory_space<vmem>>, vector<16x64xf32>
    %c0_2 = arith.constant 0 : index
    %c0_3 = arith.constant 0 : index
    %4 = vector.load %arg3[%c0_2, %c0_3] : memref<16x32xbf16, #tpu.memory_space<vmem>>, vector<16x32xbf16>
    %c0_4 = arith.constant 0 : index
    %c0_5 = arith.constant 0 : index
    %5 = vector.load %arg4[%c0_4, %c0_5] : memref<32x64xbf16, #tpu.memory_space<vmem>>, vector<32x64xbf16>
    %cst = arith.constant dense<0.000000e+00> : vector<16x64xf32>
    %6 = tpu.matmul %4, %5, %cst {dimension_numbers = #tpu.dot_dimension_numbers<[1], [0], [0], [1], [0, 0, 1, 1], [], []>} : vector<16x32xbf16>, vector<32x64xbf16>, vector<16x64xf32> -> vector<16x64xf32>
    %7 = arith.addf %3, %6 : vector<16x64xf32>
    %c0_6 = arith.constant 0 : index
    %c0_7 = arith.constant 0 : index
    %8 = vector.load %arg7[%c0_6, %c0_7] : memref<16x64xf32, #tpu.memory_space<vmem>>, vector<16x64xf32>
    tpu.vector_store %arg7[%c0_6, %c0_7], %7 {strides = array<i32>} : memref<16x64xf32, #tpu.memory_space<vmem>>, vector<16x64xf32>,
    %c0_i32_8 = arith.constant 0 : i32
    %9 = arith.cmpi eq, %arg2, %c0_i32_8 : i32
    %10 = arith.extui %9 : i1 to i32
    %c0_i32_9 = arith.constant 0 : i32
    %11 = arith.cmpi ne, %10, %c0_i32_9 : i32
    scf.if %11 {
      %c0_10 = arith.constant 0 : index
      %c0_11 = arith.constant 0 : index
      %12 = vector.load %arg7[%c0_10, %c0_11] : memref<16x64xf32, #tpu.memory_space<vmem>>, vector<16x64xf32>
      %c0_12 = arith.constant 0 : index
      %c0_13 = arith.constant 0 : index
      %13 = vector.load %arg5[%c0_12, %c0_13] : memref<1x64xf32, #tpu.memory_space<vmem>>, vector<1x64xf32>
      %14 = vector.broadcast %13 : vector<1x64xf32> to vector<16x64xf32>
      %15 = arith.addf %12, %14 : vector<16x64xf32>
      %cst_14 = arith.constant 5.000000e-01 : f32
      %16 = vector.broadcast %cst_14 : f32 to vector<16x64xf32>
      %17 = arith.mulf %16, %15 : vector<16x64xf32>
      %cst_15 = arith.constant 0.707106769 : f32
      %18 = vector.broadcast %cst_15 : f32 to vector<16x64xf32>
      %19 = arith.mulf %15, %18 : vector<16x64xf32>
      %20 = math.erf %19 : vector<16x64xf32>
      %cst_16 = arith.constant 1.000000e+00 : f32
      %21 = vector.broadcast %cst_16 : f32 to vector<16x64xf32>
      %22 = arith.addf %21, %20 : vector<16x64xf32>
      %23 = arith.mulf %17, %22 : vector<16x64xf32>
      %24 = arith.truncf %23 : vector<16x64xf32> to vector<16x64xbf16>
      %c0_17 = arith.constant 0 : index
      %c0_18 = arith.constant 0 : index
      %25 = vector.load %arg6[%c0_17, %c0_18] : memref<16x64xbf16, #tpu.memory_space<vmem>>, vector<16x64xbf16>
      tpu.vector_store %arg6[%c0_17, %c0_18], %24 {strides = array<i32>} : memref<16x64xbf16, #tpu.memory_space<vmem>>, vector<16x64xbf16>,
    } else {
    }
    return
  }
  func.func @transform_0(%arg0: i32, %arg1: i32, %arg2: i32) -> (i32, i32) {
    %c0_i32 = arith.constant 0 : i32
    return %arg0, %arg2 : i32, i32
  }
  func.func @transform_1(%arg0: i32, %arg1: i32, %arg2: i32) -> (i32, i32) {
    %c0_i32 = arith.constant 0 : i32
    return %arg2, %arg1 : i32, i32
  }
  func.func @transform_2(%arg0: i32, %arg1: i32, %arg2: i32) -> (i32, i32) {
    %c0_i32 = arith.constant 0 : i32
    %c0_i32_0 = arith.constant 0 : i32
    return %c0_i32, %arg1 : i32, i32
  }
  func.func @transform_3(%arg0: i32, %arg1: i32, %arg2: i32) -> (i32, i32) {
    %c0_i32 = arith.constant 0 : i32
    return %arg0, %arg1 : i32, i32
  }
}

module attributes {stable_mosaic.version = 11 : i64} {
  func.func @_mm_bias_add_ln_kernel(%arg0: i32, %arg1: i32, %arg2: memref<16x64xbf16, #tpu.memory_space<vmem>>, %arg3: memref<64x32xbf16, #tpu.memory_space<vmem>>, %arg4: memref<1x32xf32, #tpu.memory_space<vmem>>, %arg5: memref<16x32xbf16, #tpu.memory_space<vmem>>, %arg6: memref<1x32xf32, #tpu.memory_space<vmem>>, %arg7: memref<1x32xf32, #tpu.memory_space<vmem>>, %arg8: memref<16x32xbf16, #tpu.memory_space<vmem>>, %arg9: memref<16x32xf32, #tpu.memory_space<vmem>>) attributes {dimension_semantics = [#tpu.dimension_semantics<parallel>, #tpu.dimension_semantics<arbitrary>], iteration_bounds = array<i64: 1, 1>, scalar_prefetch = 0 : i64, scratch_operands = 1 : i64, tpu.core_type = #tpu.core_type<tc>, window_params = [{transform_indices = @transform_0, window_bounds = array<i64: 16, 64>}, {transform_indices = @transform_1, window_bounds = array<i64: 64, 32>}, {pipeline_mode = #tpu.pipeline_mode<synchronous>, transform_indices = @transform_2, window_bounds = array<i64: 1, 32>}, {transform_indices = @transform_3, window_bounds = array<i64: 16, 32>}, {pipeline_mode = #tpu.pipeline_mode<synchronous>, transform_indices = @transform_4, window_bounds = array<i64: 1, 32>}, {pipeline_mode = #tpu.pipeline_mode<synchronous>, transform_indices = @transform_5, window_bounds = array<i64: 1, 32>}, {transform_indices = @transform_6, window_bounds = array<i64: 16, 32>}]} {
    %c0_i32 = arith.constant 0 : i32
    %0 = arith.cmpi eq, %arg1, %c0_i32 : i32
    %1 = arith.extui %0 : i1 to i32
    %c0_i32_0 = arith.constant 0 : i32
    %2 = arith.cmpi ne, %1, %c0_i32_0 : i32
    scf.if %2 {
      %cst_10 = arith.constant 0.000000e+00 : f32
      %12 = vector.broadcast %cst_10 : f32 to vector<16x32xf32>
      %c0_11 = arith.constant 0 : index
      %c0_12 = arith.constant 0 : index
      %13 = vector.load %arg9[%c0_11, %c0_12] : memref<16x32xf32, #tpu.memory_space<vmem>>, vector<16x32xf32>
      tpu.vector_store %arg9[%c0_11, %c0_12], %12 {strides = array<i32>} : memref<16x32xf32, #tpu.memory_space<vmem>>, vector<16x32xf32>,
    } else {
    }
    %c0 = arith.constant 0 : index
    %c0_1 = arith.constant 0 : index
    %3 = vector.load %arg9[%c0, %c0_1] : memref<16x32xf32, #tpu.memory_space<vmem>>, vector<16x32xf32>
    %c0_2 = arith.constant 0 : index
    %c0_3 = arith.constant 0 : index
    %4 = vector.load %arg2[%c0_2, %c0_3] : memref<16x64xbf16, #tpu.memory_space<vmem>>, vector<16x64xbf16>
    %c0_4 = arith.constant 0 : index
    %c0_5 = arith.constant 0 : index
    %5 = vector.load %arg3[%c0_4, %c0_5] : memref<64x32xbf16, #tpu.memory_space<vmem>>, vector<64x32xbf16>
    %cst = arith.constant dense<0.000000e+00> : vector<16x32xf32>
    %6 = tpu.matmul %4, %5, %cst {dimension_numbers = #tpu.dot_dimension_numbers<[1], [0], [0], [1], [0, 0, 1, 1], [], []>} : vector<16x64xbf16>, vector<64x32xbf16>, vector<16x32xf32> -> vector<16x32xf32>
    %7 = arith.addf %3, %6 : vector<16x32xf32>
    %c0_6 = arith.constant 0 : index
    %c0_7 = arith.constant 0 : index
    %8 = vector.load %arg9[%c0_6, %c0_7] : memref<16x32xf32, #tpu.memory_space<vmem>>, vector<16x32xf32>
    tpu.vector_store %arg9[%c0_6, %c0_7], %7 {strides = array<i32>} : memref<16x32xf32, #tpu.memory_space<vmem>>, vector<16x32xf32>,
    %c0_i32_8 = arith.constant 0 : i32
    %9 = arith.cmpi eq, %arg1, %c0_i32_8 : i32
    %10 = arith.extui %9 : i1 to i32
    %c0_i32_9 = arith.constant 0 : i32
    %11 = arith.cmpi ne, %10, %c0_i32_9 : i32
    scf.if %11 {
      %c0_10 = arith.constant 0 : index
      %c0_11 = arith.constant 0 : index
      %12 = vector.load %arg9[%c0_10, %c0_11] : memref<16x32xf32, #tpu.memory_space<vmem>>, vector<16x32xf32>
      %c0_12 = arith.constant 0 : index
      %c0_13 = arith.constant 0 : index
      %13 = vector.load %arg4[%c0_12, %c0_13] : memref<1x32xf32, #tpu.memory_space<vmem>>, vector<1x32xf32>
      %14 = vector.broadcast %13 : vector<1x32xf32> to vector<16x32xf32>
      %15 = arith.addf %12, %14 : vector<16x32xf32>
      %c0_14 = arith.constant 0 : index
      %c0_15 = arith.constant 0 : index
      %16 = vector.load %arg5[%c0_14, %c0_15] : memref<16x32xbf16, #tpu.memory_space<vmem>>, vector<16x32xbf16>
      %17 = arith.extf %16 : vector<16x32xbf16> to vector<16x32xf32>
      %18 = arith.addf %15, %17 : vector<16x32xf32>
      %cst_16 = arith.constant dense<0.000000e+00> : vector<16xf32>
      %19 = vector.multi_reduction <add>, %18, %cst_16 [1] : vector<16x32xf32> to vector<16xf32>
      %20 = vector.shape_cast %19 : vector<16xf32> to vector<16x1xf32>
      %cst_17 = arith.constant 3.200000e+01 : f32
      %21 = vector.broadcast %cst_17 : f32 to vector<16x1xf32>
      %22 = arith.divf %20, %21 : vector<16x1xf32>
      %23 = vector.broadcast %22 : vector<16x1xf32> to vector<16x32xf32>
      %24 = arith.subf %18, %23 : vector<16x32xf32>
      %25 = arith.mulf %24, %24 : vector<16x32xf32>
      %cst_18 = arith.constant dense<0.000000e+00> : vector<16xf32>
      %26 = vector.multi_reduction <add>, %25, %cst_18 [1] : vector<16x32xf32> to vector<16xf32>
      %27 = vector.shape_cast %26 : vector<16xf32> to vector<16x1xf32>
      %cst_19 = arith.constant 3.200000e+01 : f32
      %28 = vector.broadcast %cst_19 : f32 to vector<16x1xf32>
      %29 = arith.divf %27, %28 : vector<16x1xf32>
      %30 = vector.broadcast %22 : vector<16x1xf32> to vector<16x32xf32>
      %31 = arith.subf %18, %30 : vector<16x32xf32>
      %cst_20 = arith.constant 9.99999996E-13 : f32
      %32 = vector.broadcast %cst_20 : f32 to vector<16x1xf32>
      %33 = arith.addf %29, %32 : vector<16x1xf32>
      %34 = math.rsqrt %33 : vector<16x1xf32>
      %35 = vector.broadcast %34 : vector<16x1xf32> to vector<16x32xf32>
      %36 = arith.mulf %31, %35 : vector<16x32xf32>
      %c0_21 = arith.constant 0 : index
      %c0_22 = arith.constant 0 : index
      %37 = vector.load %arg6[%c0_21, %c0_22] : memref<1x32xf32, #tpu.memory_space<vmem>>, vector<1x32xf32>
      %38 = vector.broadcast %37 : vector<1x32xf32> to vector<16x32xf32>
      %39 = arith.mulf %36, %38 : vector<16x32xf32>
      %c0_23 = arith.constant 0 : index
      %c0_24 = arith.constant 0 : index
      %40 = vector.load %arg7[%c0_23, %c0_24] : memref<1x32xf32, #tpu.memory_space<vmem>>, vector<1x32xf32>
      %41 = vector.broadcast %40 : vector<1x32xf32> to vector<16x32xf32>
      %42 = arith.addf %39, %41 : vector<16x32xf32>
      %43 = arith.truncf %42 : vector<16x32xf32> to vector<16x32xbf16>
      %c0_25 = arith.constant 0 : index
      %c0_26 = arith.constant 0 : index
      %44 = vector.load %arg8[%c0_25, %c0_26] : memref<16x32xbf16, #tpu.memory_space<vmem>>, vector<16x32xbf16>
      tpu.vector_store %arg8[%c0_25, %c0_26], %43 {strides = array<i32>} : memref<16x32xbf16, #tpu.memory_space<vmem>>, vector<16x32xbf16>,
    } else {
    }
    return
  }
  func.func @transform_0(%arg0: i32, %arg1: i32) -> (i32, i32) {
    %c0_i32 = arith.constant 0 : i32
    return %arg0, %arg1 : i32, i32
  }
  func.func @transform_1(%arg0: i32, %arg1: i32) -> (i32, i32) {
    %c0_i32 = arith.constant 0 : i32
    %c0_i32_0 = arith.constant 0 : i32
    return %arg1, %c0_i32 : i32, i32
  }
  func.func @transform_2(%arg0: i32, %arg1: i32) -> (i32, i32) {
    %c0_i32 = arith.constant 0 : i32
    %c0_i32_0 = arith.constant 0 : i32
    %c0_i32_1 = arith.constant 0 : i32
    return %c0_i32, %c0_i32_0 : i32, i32
  }
  func.func @transform_3(%arg0: i32, %arg1: i32) -> (i32, i32) {
    %c0_i32 = arith.constant 0 : i32
    %c0_i32_0 = arith.constant 0 : i32
    return %arg0, %c0_i32 : i32, i32
  }
  func.func @transform_4(%arg0: i32, %arg1: i32) -> (i32, i32) {
    %c0_i32 = arith.constant 0 : i32
    %c0_i32_0 = arith.constant 0 : i32
    %c0_i32_1 = arith.constant 0 : i32
    return %c0_i32, %c0_i32_0 : i32, i32
  }
  func.func @transform_5(%arg0: i32, %arg1: i32) -> (i32, i32) {
    %c0_i32 = arith.constant 0 : i32
    %c0_i32_0 = arith.constant 0 : i32
    %c0_i32_1 = arith.constant 0 : i32
    return %c0_i32, %c0_i32_0 : i32, i32
  }
  func.func @transform_6(%arg0: i32, %arg1: i32) -> (i32, i32) {
    %c0_i32 = arith.constant 0 : i32
    %c0_i32_0 = arith.constant 0 : i32
    return %arg0, %c0_i32 : i32, i32
  }
}

</mosaic_0001>

<bundles_post_ra>
// kernel: nlp_embedder_forward.11
= control target key start
LH: loop header
LB: loop body
LE: loop exit
PB: predicated region body
PF: predicated region fallthrough
CT: control target
= control target key end

     0   :  { %s1236_s0 = inlined_call_operand.hbm [shape: f32[2,8,32], index: 0, kind: input, shape index: {}]   ;;  %s1237_s1 = inlined_call_operand.hbm [shape: f32[2,8,32], index: 1, kind: input, shape index: {}]   ;;  %s1238_s2 = inlined_call_operand.hbm [shape: f32[8,32], index: 2, kind: input, shape index: {}]   ;;  %s1239_s3 = inlined_call_operand.hbm [shape: f32[1,32], index: 3, kind: input, shape index: {}]   ;;  %s1240_s4 = inlined_call_operand.hbm [shape: f32[1,32], index: 4, kind: input, shape index: {}]   ;;  %s1241_s5 = inlined_call_operand.hbm [shape: bf16[2,8,32], index: 5, kind: output, shape index: {}]  }
   0x1   :  { %1247 = sst [smem:[#allocation18_spill]] %s1238_s2 }
   0x2   :  { %1248 = sst [smem:[#allocation19_spill]] %s1239_s3 }
   0x3   :  { %1249 = sst [smem:[#allocation20_spill]] %s1240_s4 }
   0x4   :  { %10 = vsyncpa [#allocation3], 0 }
   0x5   :  { %12 = vsyncpa [#allocation3 + $0x1], 0 }
   0x6   :  { %13 = vsyncpa [#allocation6], 0 }
   0x7   :  { %15 = vsyncpa [#allocation6 + $0x1], 0 }
   0x8   :  { %16 = vsyncpa [#allocation9], 0 }
   0x9   :  { %17 = vsyncpa [#allocation4], 0 }
   0xa   :  { %19 = vsyncpa [#allocation4 + $0x1], 0  ;;  %s929_s18 = smov 0   ;;  %s931_s19 = smov 0  }
   0xb   :  { %s933_s20 = smov 0   ;;  %s935_s21 = smov 0  }
   0xc   :  { %s937_s22 = smov 0   ;;  %s939_s23 = smov 0  }
   0xd LB: > { %s960_s24 = sadd.s32 4294967295, %s891_s23   ;;  %s530_s25 = sadd.s32 4294967294, %s891_s23   ;;  %s891_s23 = sphi %s939_s23, %s25_s23   ;;  %s887_s22 = sphi %s937_s22, %s1276_s22   ;;  %s883_s21 = sphi %s935_s21, %s1275_s21   ;;  %s879_s20 = sphi %s933_s20, %s1274_s20   ;;  %s875_s19 = sphi %s931_s19, %s1273_s19   ;;  %s871_s18 = sphi %s929_s18, %s1272_s18  }
   0xe   : > { %p59_p0 = scmp.ne.s32.totalorder %s875_s19, %s871_s18  ;;  %p1242_p1 = scmp.eq.s32.totalorder %s960_s24, 0 }
   0xf   : > { %p187_p3 = scmp.eq.s32.totalorder %s530_s25, 1  ;;  %p531_p5 = scmp.ge.s32.totalorder %s891_s23, 1 }
  0x10   : > { %p969_p4 = por %p1242_p1, %p59_p0  ;;  %p194_p7 = scmp.lt.s32.totalorder %s891_s23, 3 }
  0x11   : > { %p974_p6 = por %p187_p3, %p59_p0  ;;  %s893_s29 = smov [#allocation7]  }
  0x12   : > { %s1250_s26 = scalar_select %p969_p4, 1, 0 }
  0x13   : > { %s1251_s27 = scalar_select %p974_p6, 1, 0 }
  0x14   : > { %p979_p8 = pnand %p531_p5, %p194_p7  ;;  %s209_s30 = sshll.u32 %s893_s29, 4  ;;  %s210_s30 = int_to_ptr.vmem [resolvable:$true] %s209_s30 }
  0x15   : > { %s894_s6 = smov [#allocation8]   ;;  %s895_s9 = smov [#allocation10]  }
  0x16   : > { %s1252_s28 = scalar_select %p979_p8, 1, 0 }
  0x17   : > { %p571_p10 = pneg %p979_p8  ;;  %s220_s7 = sshll.u32 %s894_s6, 4  ;;  %s992_s7 = int_to_ptr.vmem [resolvable:$true] %s220_s7 }
  0x18   : > { %s231_s10 = sshll.u32 %s895_s9, 4  ;;  %s1254_s2 = sld [smem:[#allocation18_spill]]  ;;  %s994_s10 = int_to_ptr.vmem [resolvable:$true] %s231_s10 }
  0x19   : > { %p988_p11 = pnand %p571_p10, %p1242_p1 }
  0x1b   : > { %p1004_p13 = pneg %p988_p11 }
  0x1e   : > { %s653_s13 = scalar_lea.hbm %s1254_s2, 128 }
  0x1f   : > { %p654_p12 = scmp.ne.s32.totalorder %s1254_s2, %s653_s13  ;;  %p660_p5 = scmp.lt.u32.totalorder %s653_s13, %s1254_s2 }
  0x21   : > { %p656_p0 = pnand %p1004_p13, %p654_p12 }
  0x23   : > { %p657_p3 = pneg %p656_p0 }
  0x25   : > { %p662_p7 = pnand %p660_p5, %p657_p3 }
  0x27   : > { %665 = shalt.err (!%p662_p7)
}
  0x28   : > { %s666_s29 = scalar_lea.vmem %s210_s30, 128  ;;  %p674_p2 = scmp.lt.s32.totalorder %s210_s30, %s210_s30 }
  0x29   : > { %p667_p10 = scmp.ne.s32.totalorder %s210_s30, %s666_s29  ;;  %p675_p6 = scmp.lt.s32.totalorder %s666_s29, %s666_s29 }
  0x2b   : > { %p669_p9 = pnand %p667_p10, %p1004_p13  ;;  %p676_p4 = por %p675_p6, %p674_p2 }
  0x2d   : > { %p670_p1 = pneg %p669_p9 }
  0x2f   : > { %p677_p8 = pnand %p676_p4, %p670_p1 }
  0x31   : > { %680 = shalt.err (!%p677_p8)
}
  0x32   : > { %574 = dma.hbm_to_vmem [thread:$0]  (!%p988_p11), %s1254_s2, 128, %s210_s30, [#allocation6]  }
  0x33   : > { %s1256_s3 = sld [smem:[#allocation19_spill]] }
  0x39   : > { %s681_s13 = scalar_lea.hbm %s1256_s3, 16 }
  0x3a   : > { %p682_p9 = scmp.ne.s32.totalorder %s1256_s3, %s681_s13  ;;  %p688_p1 = scmp.lt.u32.totalorder %s681_s13, %s1256_s3 }
  0x3c   : > { %p684_p12 = pnand %p682_p9, %p1004_p13 }
  0x3e   : > { %p685_p2 = pneg %p684_p12 }
  0x40   : > { %p690_p4 = pnand %p688_p1, %p685_p2 }
  0x42   : > { %693 = shalt.err (!%p690_p4)
}
  0x43   : > { %s694_s30 = scalar_lea.vmem %s992_s7, 16  ;;  %s701_s29 = scalar_lea.vmem %s992_s7, 32 }
  0x44   : > { %p695_p6 = scmp.ne.s32.totalorder %s992_s7, %s694_s30  ;;  %p702_p3 = scmp.lt.s32.totalorder %s992_s7, %s992_s7 }
  0x45   : > { %p703_p5 = scmp.lt.s32.totalorder %s701_s29, %s694_s30 }
  0x46   : > { %p697_p8 = pnand %p695_p6, %p1004_p13 }
  0x47   : > { %p704_p7 = por %p703_p5, %p702_p3 }
  0x48   : > { %p698_p0 = pneg %p697_p8 }
  0x4a   : > { %p705_p10 = pnand %p704_p7, %p698_p0 }
  0x4c   : > { %708 = shalt.err (!%p705_p10)
}
  0x4d   : > { %577 = dma.hbm_to_vmem [thread:$0]  (!%p988_p11), %s1256_s3, 16, %s992_s7, [#allocation9]  }
  0x4e   : > { %s1257_s4 = sld [smem:[#allocation20_spill]] }
  0x54   : > { %s709_s13 = scalar_lea.hbm %s1257_s4, 16 }
  0x55   : > { %p710_p9 = scmp.ne.s32.totalorder %s1257_s4, %s709_s13  ;;  %p716_p1 = scmp.lt.u32.totalorder %s709_s13, %s1257_s4 }
  0x57   : > { %p712_p12 = pnand %p710_p9, %p1004_p13 }
  0x59   : > { %p713_p2 = pneg %p712_p12 }
  0x5b   : > { %p718_p4 = pnand %p716_p1, %p713_p2 }
  0x5d   : > { %721 = shalt.err (!%p718_p4)
}
  0x5e   : > { %s722_s7 = scalar_lea.vmem %s994_s10, 16  ;;  %s729_s30 = scalar_lea.vmem %s994_s10, 32 }
  0x5f   : > { %p723_p6 = scmp.ne.s32.totalorder %s994_s10, %s722_s7  ;;  %p730_p3 = scmp.lt.s32.totalorder %s994_s10, %s994_s10 }
  0x60   : > { %p731_p5 = scmp.lt.s32.totalorder %s729_s30, %s722_s7 }
  0x61   : > { %p725_p8 = pnand %p723_p6, %p1004_p13 }
  0x62   : > { %p732_p7 = por %p731_p5, %p730_p3 }
  0x63   : > { %p726_p0 = pneg %p725_p8 }
  0x65   : > { %p733_p10 = pnand %p732_p7, %p726_p0 }
  0x67   : > { %736 = shalt.err (!%p733_p10)
}
  0x68   : > { %580 = dma.hbm_to_vmem [thread:$0]  (!%p988_p11), %s1257_s4, 16, %s994_s10, [#allocation9]  }
  0x69   : > { %s46_s16 = sadd.s32 1, %s879_s20  ;;  %s37_s9 = sadd.s32 1, %s887_s22 }
  0x6a   : > { %p53_p13 = scmp.ne.s32.totalorder %s879_s20, %s875_s19  ;;  %p39_p9 = scmp.ge.s32.totalorder %s37_s9, 2 }
  0x6b   : > { %p54_p12 = scmp.eq.s32.totalorder %s891_s23, 0  ;;  %p1258_p2 = scmp.eq.s32.totalorder %s960_s24, 1 }
  0x6c   : > { %p595_p4 = scmp.lt.s32.totalorder %s891_s23, 2  ;;  %s1278_s9 = smov (%p39_p9, %s37_s9), 0 }
  0x6d   : > { %p1075_p1 = por %p1258_p2, %p53_p13  ;;  %1260 = sst [smem:[#allocation17_spill]] %s1278_s9 }
  0x6e   : > { %p55_p6 = por %p54_p12, %p53_p13  ;;  %s242_s11 = sand.u32 1, %s879_s20  }
  0x6f   : > { %s1259_s8 = scalar_select %p1075_p1, 1, 0 }
  0x70   : > { %s41_s12 = ssub.s32 %s887_s22, %s1278_s9  ;;  %s1085_s10 = sshll.u32 %s242_s11, 3 }
  0x71   : > { %p44_p11 = scmp.eq.s32.totalorder %s41_s12, 0  ;;  %s537_s13 = sshll.u32 %s887_s22, 7 }
  0x72   : > { %s1094_s25 = scalar_lea.hbm %s1236_s0, %s537_s13  ;;  %s246_s7 = scalar_lea.vmem [#allocation2], %s1085_s10 }
  0x73   : > { %s1089_s14 = scalar_select %p44_p11, %s879_s20, %s46_s16  }
  0x74   : > { %s254_s30 = sshll.u32 %s246_s7, 4  ;;  %p1101_p8 = pnand %p595_p4, %p55_p6  ;;  %s1097_s30 = int_to_ptr.vmem [resolvable:$true] %s254_s30 }
  0x75   : > { %s1108_s12 = scalar_lea.hbm %s1237_s1, %s537_s13  ;;  %s261_s15 = sand.u32 1, %s891_s23  }
  0x76   : > { %s243_s17 = scalar_lea.sflag [#allocation3], %s242_s11  ;;  %s737_s2 = scalar_lea.hbm %s1094_s25, 128 }
  0x77   : > { %p738_p0 = scmp.ne.s32.totalorder %s1094_s25, %s737_s2  ;;  %p739_p3 = pneg %p1101_p8 }
  0x78   : > { %s742_s4 = scalar_lea.hbm %s1236_s0, 256  ;;  %p743_p10 = scmp.lt.u32.totalorder %s1094_s25, %s1236_s0 }
  0x79   : > { %p740_p5 = pnand %p739_p3, %p738_p0  ;;  %p744_p13 = scmp.lt.u32.totalorder %s742_s4, %s737_s2 }
  0x7a   : > { %p746_p12 = scmp.lt.u32.totalorder %s737_s2, %s1094_s25 }
  0x7b   : > { %p741_p7 = pneg %p740_p5  ;;  %p745_p9 = por %p744_p13, %p743_p10 }
  0x7d   : > { %p747_p2 = por %p746_p12, %p745_p9 }
  0x7f   : > { %p748_p4 = pnand %p747_p2, %p741_p7 }
  0x81   : > { %751 = shalt.err (!%p748_p4)
}
  0x82   : > { %s752_s11 = scalar_lea.vmem %s1097_s30, 128  ;;  %s896_s3 = smov [#allocation2]  }
  0x83   : > { %p753_p6 = scmp.ne.s32.totalorder %s1097_s30, %s752_s11  ;;  %s757_s13 = sshll.u32 %s896_s3, 4  ;;  %s758_s13 = int_to_ptr.vmem [resolvable:$false] %s757_s13 }
  0x84   : > { %s759_s9 = scalar_lea.vmem %s758_s13, 256  ;;  %p760_p5 = scmp.lt.s32.totalorder %s1097_s30, %s758_s13 }
  0x85   : > { %p755_p11 = pnand %p753_p6, %p739_p3  ;;  %p761_p10 = scmp.lt.s32.totalorder %s759_s9, %s752_s11 }
  0x87   : > { %p756_p0 = pneg %p755_p11  ;;  %p762_p13 = por %p761_p10, %p760_p5 }
  0x89   : > { %p763_p9 = pnand %p762_p13, %p756_p0 }
  0x8b   : > { %766 = shalt.err (!%p763_p9)
}
  0x8c   : > { %584 = dma.hbm_to_vmem [thread:$0]  (!%p1101_p8), %s1094_s25, 128, %s1097_s30, %s243_s17  }
  0x8d   : > { %s265_s2 = scalar_lea.vmem [#allocation5], %s1085_s10  ;;  %s262_s16 = scalar_lea.sflag [#allocation6], %s261_s15 }
  0x8e   : > { %s273_s4 = sshll.u32 %s265_s2, 4  ;;  %s767_s7 = scalar_lea.hbm %s1108_s12, 128  ;;  %s274_s4 = int_to_ptr.vmem [resolvable:$true] %s273_s4 }
  0x8f   : > { %p768_p7 = scmp.ne.s32.totalorder %s1108_s12, %s767_s7  ;;  %s772_s3 = scalar_lea.hbm %s1237_s1, 256 }
  0x90   : > { %p773_p4 = scmp.lt.u32.totalorder %s1108_s12, %s1237_s1  ;;  %p774_p6 = scmp.lt.u32.totalorder %s772_s3, %s767_s7 }
  0x91   : > { %p770_p12 = pnand %p768_p7, %p739_p3  ;;  %p776_p0 = scmp.lt.u32.totalorder %s767_s7, %s1108_s12 }
  0x92   : > { %p775_p11 = por %p774_p6, %p773_p4 }
  0x93   : > { %p771_p2 = pneg %p770_p12 }
  0x94   : > { %p777_p5 = por %p776_p0, %p775_p11 }
  0x96   : > { %p778_p10 = pnand %p777_p5, %p771_p2 }
  0x98   : > { %781 = shalt.err (!%p778_p10)
}
  0x99   : > { %s782_s10 = scalar_lea.vmem %s274_s4, 128  ;;  %s897_s25 = smov [#allocation5]  }
  0x9a   : > { %p783_p13 = scmp.ne.s32.totalorder %s274_s4, %s782_s10  ;;  %s787_s30 = sshll.u32 %s897_s25, 4  ;;  %s788_s30 = int_to_ptr.vmem [resolvable:$false] %s787_s30 }
  0x9b   : > { %s789_s15 = scalar_lea.vmem %s788_s30, 256  ;;  %p790_p12 = scmp.lt.s32.totalorder %s274_s4, %s788_s30 }
  0x9c   : > { %p785_p9 = pnand %p783_p13, %p739_p3  ;;  %p791_p1 = scmp.lt.s32.totalorder %s789_s15, %s782_s10 }
  0x9e   : > { %p786_p7 = pneg %p785_p9  ;;  %p792_p4 = por %p791_p1, %p790_p12 }
  0xa0   : > { %p793_p6 = pnand %p792_p4, %p786_p7 }
  0xa2   : > { %796 = shalt.err (!%p793_p6)
}
  0xa3   : > { %587 = dma.hbm_to_vmem [thread:$0]  (!%p1101_p8), %s1108_s12, 128, %s274_s4, %s262_s16  }
  0xa4   : > { %p1262_p2 = scmp.ne.s32.totalorder %s1252_s28, 0 }
  0xa5   : > { %s1161_s17 = sand.u32 (!%p1262_p2), 1, %s875_s19   ;;  %p1263_p3 = scmp.ne.s32.totalorder (!%p1262_p2), %s1250_s26, 0 }
  0xa6   : > { %282 = sbr.rel (%p1262_p2) target bundleno = 517 (0x205), region = 40  ;;  %s541_s2 = sshll.u32 (!%p1262_p2), %s1161_s17, 3 }
  0xa7   : > { %s285_s7 = scalar_lea.sflag (!%p1262_p2), [#allocation3], %s1161_s17  ;;  %s288_s6 = scalar_lea.vmem (!%p1262_p2), [#allocation2], %s541_s2 }
  0xad   : > { %850 = dma.done.wait (%p1263_p3), %s285_s7, 128  }
  0xae   : > { %852 = vsyncadd (%p1263_p3), %s285_s7, 4294967168  ;;  %s293_s29 = sand.u32 1, %s960_s24   ;;  %s297_s28 = scalar_lea.vmem [#allocation5], %s541_s2 }
  0xaf   : > { %s294_s12 = scalar_lea.sflag [#allocation6], %s293_s29 }
  0xb0   : > { %854 = dma.done.wait (%p1263_p3), %s294_s12, 128  }
  0xb1   : > { %856 = vsyncadd (%p1263_p3), %s294_s12, 4294967168  ;;  %p1264_p1 = scmp.eq.s32.totalorder %s960_s24, 0 }
  0xb3   : > { %858 = dma.done.wait (%p1264_p1), [#allocation6], 128   ;;  %p1265_p8 = pmov %p1264_p1 }
  0xb4   : > { %p1266_p11 = pmov %p1264_p1 }
  0xb5   : > { %860 = vsyncadd (%p1265_p8), [#allocation6], 4294967168 }
  0xb6   : > { %862 = dma.done.wait (%p1266_p11), [#allocation9], 32   ;;  %p1267_p0 = pmov %p1264_p1 }
  0xb7   : > { %v341_v0 = vld [vmem:[%s288_s6] sm:$0xff]  ;;  %v342_v1 = vld [vmem:[%s297_s28] sm:$0xff]  ;;  %vm346_vm0 = vcmask 261120   ;;  %s546_s24 = sshll.u32 %s1161_s17, 2  ;;  %s550_s26 = sshll.u32 %s883_s21, 6  ;;  %vm378_vm1 = vcmask 257024  }
  0xb8   : > { %864 = vsyncadd (%p1267_p0), [#allocation9], 4294967264  ;;  %v344_v2 = vld [vmem:[#allocation7] sm:$0xff]  ;;  %v343_v3 = vadd.f32 %v342_v1, %v341_v0  ;;  %v547_v15 = vld [vmem:[#allocation8] ss:$0 sm:$0xff]  ;;  %s340_s4 = scalar_lea.vmem [#allocation11], %s546_s24  ;;  %s1187_s13 = scalar_lea.hbm %s1241_s5, %s550_s26 }
  0xb9   : > { %v548_v17 = vld [vmem:[#allocation10] ss:$0 sm:$0xff]  ;;  %s395_s16 = sshll.u32 %s340_s4, 4  ;;  %s381_s9 = scalar_lea.sflag [#allocation4], %s1161_s17  ;;  %s1189_s16 = int_to_ptr.vmem [resolvable:$true] %s395_s16 }
  0xba   : > { %v345_v4 = vadd.f32 %v344_v2, %v343_v3  ;;  %s797_s10 = scalar_lea.vmem %s1189_s16, 64  ;;  %p1268_p10 = scmp.ne.s32.totalorder %s1259_s8, 0 }
  0xbb   : > { %p798_p5 = scmp.ne.s32.totalorder %s1189_s16, %s797_s10  ;;  %s898_s21 = smov [#allocation11]  }
  0xbc   : > { %v347_v5 = vsel %vm346_vm0, %v345_v4, 0.0  ;;  %s801_s25 = sshll.u32 %s898_s21, 4  ;;  %s802_s25 = int_to_ptr.vmem [resolvable:$false] %s801_s25 }
  0xbd   : > { %348 = vadd.xlane.f32.xlu0 %v347_v5  ;;  %p799_p13 = pnand %p798_p5, %p1268_p10  ;;  %s803_s30 = scalar_lea.vmem %s802_s25, 128 }
  0xbe   : > { %p804_p7 = scmp.lt.s32.totalorder %s1189_s16, %s802_s25  ;;  %p805_p12 = scmp.lt.s32.totalorder %s803_s30, %s797_s10 }
  0xbf   : > { %p800_p9 = pneg %p799_p13 }
  0xc0   : > { %p806_p4 = por %p805_p12, %p804_p7 }
  0xc2   : > { %p807_p6 = pnand %p806_p4, %p800_p9 }
 0x14a   : > { %v349_v6 = vpop.xlane.xlu0 %348 }
 0x14b   : > { %v351_v7 = vmul.f32 0.03125, %v349_v6 }
 0x14d   : > { %v352_v8 = vsub.f32 %v345_v4, %v351_v7 }
 0x14f   : > { %v353_v9 = vmul.f32 %v352_v8, %v352_v8 }
 0x151   : > { %v354_v10 = vsel %vm346_vm0, %v353_v9, 0.0 }
 0x152   : > { %355 = vadd.xlane.f32.xlu0 %v354_v10 }
 0x1df   : > { %v356_v11 = vpop.xlane.xlu0 %355 }
 0x1e0   : > { %v357_v12 = vmul.f32 0.03125, %v356_v11 }
 0x1e2   : > { %v358_v13 = vadd.f32 1e-12, %v357_v12 }
 0x1e4   : > { %651 = vrsqrt.f32 %v358_v13 }
 0x1ee   : > { %v652_v14 = vpop.eup %651 }
 0x1ef   : > { %v360_v16 = vmul.f32 %v652_v14, %v352_v8 }
 0x1f1   : > { %v368_v18 = vmul.f32 %v547_v15, %v360_v16 }
 0x1f3   : > { %v376_v19 = vadd.f32 %v548_v17, %v368_v18 }
 0x1f5   : > { %v377_v20 = vpack.c.bf16 %v376_v19, %v376_v19 }
 0x1f7   : > { %379 = vst.msk [vmem:[%s340_s4] sm:$0xf] %vm378_vm1, %v377_v20 }
 0x1f8   : > { %810 = shalt.err (!%p807_p6)
}
 0x1f9   : > { %s811_s15 = scalar_lea.hbm %s1187_s13, 64  ;;  %s815_s7 = scalar_lea.hbm %s1241_s5, 128 }
 0x1fa   : > { %p812_p2 = scmp.ne.s32.totalorder %s1187_s13, %s811_s15  ;;  %p816_p8 = scmp.lt.u32.totalorder %s1187_s13, %s1241_s5 }
 0x1fb   : > { %p817_p11 = scmp.lt.u32.totalorder %s815_s7, %s811_s15  ;;  %p819_p5 = scmp.lt.u32.totalorder %s811_s15, %s1187_s13 }
 0x1fc   : > { %p813_p3 = pnand %p812_p2, %p1268_p10 }
 0x1fd   : > { %p818_p0 = por %p817_p11, %p816_p8 }
 0x1fe   : > { %p814_p1 = pneg %p813_p3 }
 0x1ff   : > { %p820_p13 = por %p819_p5, %p818_p0 }
 0x201   : > { %p821_p9 = pnand %p820_p13, %p814_p1 }
 0x203   : > { %824 = shalt.err (!%p821_p9)
}
 0x204   : > { %569 = dma.vmem_to_hbm [thread:$0]  (%p1268_p10), %s1189_s16, 64, %s1187_s13, %s381_s9  }
 0x205 PF: > { %s407_s12 = sand.u32 1, %s871_s18   ;;  %p1269_p7 = scmp.ne.s32.totalorder %s1251_s27, 0 }
 0x206   : > { %p1270_p12 = scmp.ge.s32.totalorder %s891_s23, 2  ;;  %s408_s28 = scalar_lea.sflag [#allocation4], %s407_s12 }
 0x208   : > { %p589_p4 = pnand %p1270_p12, %p1269_p7 }
 0x20a   : > { %866 = dma.done.wait (!%p589_p4), %s408_s28, 64  }
 0x20b   : > { %868 = vsyncadd (!%p589_p4), %s408_s28, 4294967232  ;;  %s25_s23 = sadd.s32 1, %s891_s23   ;;  %s1271_s8 = sld [smem:[#allocation17_spill]] }
 0x20c   : > { %p22_p6 = scmp.ge.s32.totalorder %s25_s23, 4   ;;  %s1272_s18 = smov %s875_s19 }
 0x20d   : > { %s1273_s19 = smov %s879_s20  ;;  %s1274_s20 = smov %s1089_s14 }
 0x20e   : > { %s1275_s21 = smov %s887_s22  ;;  %24 = sbr.rel (!%p22_p6) target bundleno = 13 (0xd), region = 111 }
 0x211   : > { %s1276_s22 = smov %s1271_s8 }
 0x215   :  { %413 = vsyncpa [#allocation3], 1 }
 0x216   :  { %415 = vsyncpa [#allocation3 + $0x1], 1 }
 0x217   :  { %416 = vsyncpa [#allocation6], 1 }
 0x218   :  { %418 = vsyncpa [#allocation6 + $0x1], 1 }
 0x219   :  { %419 = vsyncpa [#allocation9], 1 }
 0x21a   :  { %420 = vsyncpa [#allocation4], 1 }
 0x21b   :  { %422 = vsyncpa [#allocation4 + $0x1], 1 }

// kernel: nlp_embedder_forward.12
= control target key start
LH: loop header
LB: loop body
LE: loop exit
PB: predicated region body
PF: predicated region fallthrough
CT: control target
= control target key end

     0   :  { %8 = vsyncpa [#allocation4], 0  ;;  %s401_s0 = inlined_call_operand.hbm [shape: bf16[16,32], index: 0, kind: input, shape index: {}]   ;;  %s402_s1 = inlined_call_operand.hbm [shape: bf16[32,96], index: 1, kind: input, shape index: {}]   ;;  %s403_s2 = inlined_call_operand.hbm [shape: f32[1,96], index: 2, kind: input, shape index: {}]   ;;  %s404_s3 = inlined_call_operand.hbm [shape: bf16[16,96], index: 3, kind: output, shape index: {}]  }
   0x1   :  { %9 = vsyncpa [#allocation7], 0 }
   0x2   :  { %10 = vsyncpa [#allocation5], 0  ;;  %s305_s12 = smov [#allocation6]   ;;  %s306_s14 = smov [#allocation3]  }
   0x3   :  { %s28_s13 = sshll.u32 %s305_s12, 4  ;;  %s16_s15 = sshll.u32 %s306_s14, 4  ;;  %s29_s13 = int_to_ptr.vmem [resolvable:$true] %s28_s13  ;;  %s333_s15 = int_to_ptr.vmem [resolvable:$true] %s16_s15 }
   0x4   :  { %s211_s18 = scalar_lea.hbm %s402_s1, 256 }
   0x5   :  { %p212_p0 = scmp.ne.s32.totalorder %s402_s1, %s211_s18  ;;  %p215_p1 = scmp.lt.u32.totalorder %s211_s18, %s402_s1 }
   0x7   :  { %p217_p2 = pnand %p215_p1, %p212_p0 }
   0x9   :  { %220 = shalt.err (!%p217_p2)
}
   0xa   :  { %s221_s23 = scalar_lea.vmem %s29_s13, 256  ;;  %p226_p4 = scmp.lt.s32.totalorder %s29_s13, %s29_s13 }
   0xb   :  { %p222_p3 = scmp.ne.s32.totalorder %s29_s13, %s221_s23  ;;  %p227_p5 = scmp.lt.s32.totalorder %s221_s23, %s221_s23 }
   0xd   :  { %p228_p6 = por %p227_p5, %p226_p4 }
   0xf   :  { %p229_p7 = pnand %p228_p6, %p222_p3 }
  0x11   :  { %232 = shalt.err (!%p229_p7)
}
  0x12   :  { %s307_s24 = smov 64   ;;  %s308_s25 = smov 4  }
  0x13   :  { %34 = dma.hbm_to_vmem [thread:$0]  %s402_s1, 256, %s29_s13, [#allocation7], %s307_s24, %s307_s24, %s308_s25  }
  0x14   :  { %s233_s30 = scalar_lea.hbm %s401_s0, 128 }
  0x15   :  { %p234_p8 = scmp.ne.s32.totalorder %s401_s0, %s233_s30  ;;  %p237_p9 = scmp.lt.u32.totalorder %s233_s30, %s401_s0 }
  0x17   :  { %p239_p10 = pnand %p237_p9, %p234_p8 }
  0x19   :  { %242 = shalt.err (!%p239_p10)
}
  0x1a   :  { %s243_s8 = scalar_lea.vmem %s333_s15, 128  ;;  %p248_p12 = scmp.lt.s32.totalorder %s333_s15, %s333_s15 }
  0x1b   :  { %p244_p11 = scmp.ne.s32.totalorder %s333_s15, %s243_s8  ;;  %p249_p13 = scmp.lt.s32.totalorder %s243_s8, %s243_s8 }
  0x1d   :  { %p250_p0 = por %p249_p13, %p248_p12 }
  0x1f   :  { %p251_p1 = pnand %p250_p0, %p244_p11 }
  0x21   :  { %254 = shalt.err (!%p251_p1)
}
  0x22   :  { %22 = dma.hbm_to_vmem [thread:$0]  %s401_s0, 128, %s333_s15, [#allocation4], %s307_s24, %s307_s24, %s308_s25  }
  0x23   :  { %s309_s10 = smov [#allocation8]   ;;  %s255_s14 = scalar_lea.hbm %s403_s2, 16 }
  0x24   :  { %s41_s11 = sshll.u32 %s309_s10, 4  ;;  %p256_p2 = scmp.ne.s32.totalorder %s403_s2, %s255_s14  ;;  %s42_s11 = int_to_ptr.vmem [resolvable:$true] %s41_s11 }
  0x25   :  { %p259_p3 = scmp.lt.u32.totalorder %s255_s14, %s403_s2 }
  0x27   :  { %p261_p4 = pnand %p259_p3, %p256_p2 }
  0x29   :  { %264 = shalt.err (!%p261_p4)
}
  0x2a   :  { %s265_s20 = scalar_lea.vmem %s42_s11, 16  ;;  %s269_s0 = scalar_lea.vmem %s42_s11, 32 }
  0x2b   :  { %p266_p5 = scmp.ne.s32.totalorder %s42_s11, %s265_s20  ;;  %p270_p6 = scmp.lt.s32.totalorder %s42_s11, %s42_s11 }
  0x2c   :  { %p271_p7 = scmp.lt.s32.totalorder %s269_s0, %s265_s20 }
  0x2e   :  { %p272_p8 = por %p271_p7, %p270_p6 }
  0x30   :  { %p273_p9 = pnand %p272_p8, %p266_p5 }
  0x32   :  { %276 = shalt.err (!%p273_p9)
}
  0x33   :  { %44 = dma.hbm_to_vmem [thread:$0]  %s403_s2, 16, %s42_s11, [#allocation7]  }
  0x34   :  { %299 = dma.done.wait [#allocation4], 128  }
  0x35   :  { %300 = vsyncadd [#allocation4], 4294967168 }
  0x36   :  { %301 = dma.done.wait [#allocation7], 272  }
  0x37   :  { %302 = vsyncadd [#allocation7], 4294967024  ;;  %vm59_vm0 = vcmask 785408   ;;  %v310_v0 = vmov 0.0   ;;  %vm311_vm1 = vmmov 0   ;;  %v208_v1 = vld [vmem:[#allocation6] sm:$0xff]  }
  0x38   :  { %60 = vst.msk [vmem:[#allocation2] sm:$0xff] %vm59_vm0, %v310_v0  ;;  %61 = vst.msk [vmem:[#allocation2 + $0x8] sm:$0xff] %vm59_vm0, %v310_v0  ;;  %192 = vmatprep.subr.bf16.mxu0 %v310_v0  ;;  %196 = vmatprep.mubr.msk.bf16.mxu0 %vm311_vm1, %v310_v0  ;;  %v209_v2 = vld [vmem:[#allocation6 + $0x8] sm:$0xff]   ;;  %v210_v3 = vld [vmem:[#allocation3] sm:$0xff]   ;;  %vm87_vm2 = vcmask 261120   ;;  %vm159_vm3 = vcmask 781312  }
  0x39   :  { %193 = vmatpush3.bf16.msra.mxu0 %v208_v1  ;;  %v184_v12 = vld [vmem:[#allocation8] ss:$0 sm:$0xff]  ;;  %s312_s2 = smov [#allocation9]  }
  0x3a   :  { %194 = vmatprep.subr.bf16.mxu0 %v310_v0  ;;  %s167_s22 = sshll.u32 %s312_s2, 4  ;;  %s168_s22 = int_to_ptr.vmem [resolvable:$true] %s167_s22 }
  0x3b   :  { %s277_s23 = scalar_lea.vmem %s168_s22, 128  ;;  %p282_p11 = scmp.lt.s32.totalorder %s168_s22, %s168_s22 }
  0x3c   :  { %p278_p10 = scmp.ne.s32.totalorder %s168_s22, %s277_s23  ;;  %p283_p12 = scmp.lt.s32.totalorder %s277_s23, %s277_s23 }
  0x3d   :  { %195 = vmatpush3.bf16.msra.mxu0 %v209_v2 }
  0x3e   :  { %p284_p13 = por %p283_p12, %p282_p11 }
  0x3f   :  { %v62_v4 = vld [vmem:[#allocation2] sm:$0xff]  ;;  %v63_v6 = vld [vmem:[#allocation2 + $0x8] sm:$0xff] }
  0x40   :  { %197 = vmatmul.mubr.msk.bf16.vlgmr.msra.gmra.mrb[0].mxu0 %vm87_vm2, %v210_v3  ;;  %p285_p0 = pnand %p284_p13, %p278_p10 }
 0x113   :  { %v125_v5 = vpop.f32.mrb[0].mxu0 }
 0x114   :  { %v132_v7 = vadd.f32 %v125_v5, %v62_v4  ;;  %v198_v8 = vpop.f32.mrb[1].mxu0 }
 0x115   :  { %v128_v9 = vpop.f32.mrb[2].mxu0 }
 0x116   :  { %135 = vst.msk [vmem:[#allocation2] sm:$0xff] %vm59_vm0, %v132_v7  ;;  %v133_v10 = vadd.f32 %v128_v9, %v63_v6  ;;  %v199_v11 = vpop.f32.mrb[3].mxu0 }
 0x118   :  { %136 = vst.msk [vmem:[#allocation2 + $0x8] sm:$0xff] %vm59_vm0, %v133_v10 }
 0x11d   :  { %v140_v13 = vld [vmem:[#allocation2] sm:$0xff] }
 0x11e   :  { %v149_v14 = vadd.f32 %v184_v12, %v140_v13 }
 0x11f   :  { %v141_v15 = vld [vmem:[#allocation2 + $0x8] sm:$0xff] }
 0x120   :  { %v150_v16 = vadd.f32 %v184_v12, %v141_v15  ;;  %v187_v17 = vpack.c.bf16 %v149_v14, %v149_v14 }
 0x122   :  { %v188_v18 = vpack.c.bf16 %v150_v16, %v150_v16  ;;  %160 = vst.msk [vmem:[#allocation9] sm:$0xf] %vm159_vm3, %v187_v17 }
 0x124   :  { %161 = vst.msk [vmem:[#allocation9 + $0x4] sm:$0xf] %vm159_vm3, %v188_v18 }
 0x125   :  { %288 = shalt.err (!%p285_p0)
}
 0x126   :  { %s289_s28 = scalar_lea.hbm %s404_s3, 128 }
 0x127   :  { %p290_p1 = scmp.ne.s32.totalorder %s404_s3, %s289_s28  ;;  %p293_p2 = scmp.lt.u32.totalorder %s289_s28, %s404_s3 }
 0x129   :  { %p295_p3 = pnand %p293_p2, %p290_p1 }
 0x12b   :  { %298 = shalt.err (!%p295_p3)
}
 0x12c   :  { %173 = dma.vmem_to_hbm [thread:$0]  %s168_s22, 128, %s404_s3, [#allocation5], %s307_s24, %s307_s24, %s308_s25  }
 0x12d   :  { %303 = dma.done.wait [#allocation5], 128  }
 0x12e   :  { %304 = vsyncadd [#allocation5], 4294967168 }
 0x12f   :  { %177 = vsyncpa [#allocation4], 1 }
 0x130   :  { %178 = vsyncpa [#allocation7], 1 }
 0x131   :  { %179 = vsyncpa [#allocation5], 1 }

// kernel: nlp_embedder_forward.13
= control target key start
LH: loop header
LB: loop body
LE: loop exit
PB: predicated region body
PF: predicated region fallthrough
CT: control target
= control target key end

     0   :  { %6 = vsyncpa [#allocation3], 0  ;;  %s1191_s0 = inlined_call_operand.hbm [shape: bf16[2,8,96], index: 0, kind: input, shape index: {}]   ;;  %s1192_s1 = inlined_call_operand.hbm [shape: bf16[2,8,32], index: 1, kind: output, shape index: {}]  }
   0x1   :  { %8 = vsyncpa [#allocation3 + $0x1], 0 }
   0x2   :  { %9 = vsyncpa [#allocation4], 0 }
   0x3   :  { %11 = vsyncpa [#allocation4 + $0x1], 0  ;;  %s990_s6 = smov 0   ;;  %s992_s7 = smov 0  }
   0x4   :  { %s994_s8 = smov 0   ;;  %s996_s9 = smov 0  }
   0x5   :  { %s998_s10 = smov 0   ;;  %s1000_s11 = smov 0  }
   0x6 LB: > { %s723_s12 = sadd.s32 4294967295, %s968_s11   ;;  %s724_s13 = sadd.s32 4294967294, %s968_s11   ;;  %s968_s11 = sphi %s1000_s11, %s17_s11   ;;  %s964_s10 = sphi %s998_s10, %s1208_s10   ;;  %s960_s9 = sphi %s996_s9, %s1207_s9   ;;  %s956_s8 = sphi %s994_s8, %s1206_s8   ;;  %s952_s7 = sphi %s992_s7, %s1205_s7   ;;  %s948_s6 = sphi %s990_s6, %s1204_s6  }
   0x7   : > { %s29_s14 = sadd.s32 1, %s964_s10  ;;  %s38_s15 = sadd.s32 1, %s956_s8 }
   0x8   : > { %p31_p0 = scmp.ge.s32.totalorder %s29_s14, 2  ;;  %p45_p1 = scmp.ne.s32.totalorder %s956_s8, %s952_s7 }
   0x9   : > { %p46_p2 = scmp.eq.s32.totalorder %s968_s11, 0  ;;  %p51_p3 = scmp.ne.s32.totalorder %s952_s7, %s948_s6 }
   0xa   : > { %s1210_s14 = smov (%p31_p0, %s29_s14), 0  ;;  %p52_p5 = scmp.eq.s32.totalorder %s723_s12, 0 }
   0xb   : > { %p1031_p4 = por %p46_p2, %p45_p1  ;;  %s33_s17 = ssub.s32 %s964_s10, %s1210_s14 }
   0xc   : > { %p77_p6 = scmp.eq.s32.totalorder %s723_s12, 1  ;;  %p36_p7 = scmp.eq.s32.totalorder %s33_s17, 0 }
   0xd   : > { %p1037_p8 = por %p52_p5, %p51_p3  ;;  %p83_p10 = scmp.eq.s32.totalorder %s724_s13, 1 }
   0xe   : > { %p1041_p9 = por %p77_p6, %p45_p1  ;;  %p788_p13 = scmp.lt.s32.totalorder %s968_s11, 2 }
   0xf   : > { %s1046_s20 = scalar_select %p36_p7, %s956_s8, %s38_s15  }
  0x10   : > { %s1196_s19 = scalar_select %p1041_p9, 1, 0 }
  0x11   : > { %p1048_p11 = por %p83_p10, %p51_p3  ;;  %s103_s22 = sand.u32 1, %s956_s8  }
  0x12   : > { %s727_s23 = sshll.u32 %s103_s22, 2  ;;  %s728_s24 = sshll.u32 %s964_s10, 6 }
  0x13   : > { %s1197_s21 = scalar_select %p1048_p11, 1, 0 }
  0x14   : > { %s1059_s27 = scalar_lea.hbm %s1191_s0, %s728_s24  ;;  %s107_s28 = scalar_lea.vmem [#allocation2], %s727_s23 }
  0x15   : > { %s115_s29 = sshll.u32 %s107_s28, 4  ;;  %p1065_p0 = pnand %p788_p13, %p1031_p4  ;;  %s1061_s29 = int_to_ptr.vmem [resolvable:$true] %s115_s29 }
  0x16   : > { %s104_s2 = scalar_lea.sflag [#allocation3], %s103_s22  ;;  %s856_s3 = scalar_lea.hbm %s1059_s27, 64 }
  0x17   : > { %p857_p3 = scmp.ne.s32.totalorder %s1059_s27, %s856_s3  ;;  %p858_p5 = pneg %p1065_p0 }
  0x18   : > { %s861_s12 = scalar_lea.hbm %s1191_s0, 128  ;;  %p862_p4 = scmp.lt.u32.totalorder %s1059_s27, %s1191_s0 }
  0x19   : > { %p859_p6 = pnand %p858_p5, %p857_p3  ;;  %p863_p10 = scmp.lt.u32.totalorder %s861_s12, %s856_s3 }
  0x1a   : > { %p865_p12 = scmp.lt.u32.totalorder %s856_s3, %s1059_s27 }
  0x1b   : > { %p860_p7 = pneg %p859_p6  ;;  %p864_p13 = por %p863_p10, %p862_p4 }
  0x1d   : > { %p866_p1 = por %p865_p12, %p864_p13 }
  0x1f   : > { %p867_p2 = pnand %p866_p1, %p860_p7 }
  0x21   : > { %870 = shalt.err (!%p867_p2)
}
  0x22   : > { %s871_s16 = scalar_lea.vmem %s1061_s29, 64  ;;  %s970_s17 = smov [#allocation2]  }
  0x23   : > { %p872_p3 = scmp.ne.s32.totalorder %s1061_s29, %s871_s16  ;;  %s876_s22 = sshll.u32 %s970_s17, 4  ;;  %s877_s22 = int_to_ptr.vmem [resolvable:$false] %s876_s22 }
  0x24   : > { %s878_s23 = scalar_lea.vmem %s877_s22, 128  ;;  %p879_p9 = scmp.lt.s32.totalorder %s1061_s29, %s877_s22 }
  0x25   : > { %p874_p6 = pnand %p872_p3, %p858_p5  ;;  %p880_p4 = scmp.lt.s32.totalorder %s878_s23, %s871_s16 }
  0x27   : > { %p875_p11 = pneg %p874_p6  ;;  %p881_p10 = por %p880_p4, %p879_p9 }
  0x29   : > { %p882_p12 = pnand %p881_p10, %p875_p11 }
  0x2b   : > { %885 = shalt.err (!%p882_p12)
}
  0x2c   : > { %783 = dma.hbm_to_vmem [thread:$0]  (!%p1065_p0), %s1059_s27, 64, %s1061_s29, %s104_s2  }
  0x2d   : > { %p1199_p1 = scmp.lt.s32.totalorder %s968_s11, 3  ;;  %p1200_p2 = scmp.ge.s32.totalorder %s968_s11, 1 }
  0x2f   : > { %p121_p5 = pnand %p1200_p2, %p1199_p1 }
  0x30   : > { %s1101_s24 = sand.u32 (!%p121_p5), 1, %s952_s7  }
  0x31   : > { %124 = sbr.rel (%p121_p5) target bundleno = 1423 (0x58f), region = 24  ;;  %s730_s25 = sshll.u32 (!%p121_p5), %s1101_s24, 2 }
  0x32   : > { %s127_s26 = scalar_lea.sflag (!%p121_p5), [#allocation3], %s1101_s24  ;;  %s130_s28 = scalar_lea.vmem (!%p121_p5), [#allocation2], %s730_s25 }
  0x38   : > { %939 = dma.done.wait (%p1037_p8), %s127_s26, 64  }
  0x39   : > { %941 = vsyncadd (%p1037_p8), %s127_s26, 4294967232  ;;  %v150_v0 = vld [vmem:[%s130_s28] sm:$0xf]  ;;  %s971_s27 = smov 112   ;;  %s972_s29 = smov 96   ;;  %v973_v2 = vmov 0.0   ;;  %v508_v53 = vlaneseq }
  0x3a   : > { %152 = vrot.lane.b32.xlu0 %v150_v0, %s971_s27  ;;  %v732_v1 = vcombine.low %v150_v0, %v150_v0  ;;  %752 = vmatprep.subr.bf16.mxu0 %v973_v2  ;;  %vm974_vm0 = vmmov 0   ;;  %vm196_vm1 = vcmask 130048   ;;  %vm283_vm2 = vcmask 64512   ;;  %s975_s18 = smov 64   ;;  %s978_s30 = smov 16  }
  0x3b   : > { %758 = vmatprep.subr.bf16.mxu1 %v973_v2  ;;  %754 = vmatprep.mubr.msk.bf16.mxu0 %vm974_vm0, %v973_v2  ;;  %v976_v51 = vmov 1983009808   ;;  %v509_v55 = vshrl.u32 %v508_v53, 7  ;;  %v977_v56 = vmov 1934713408   ;;  %s741_s2 = sshll.u32 %s960_s9, 6 }
  0x3c   : > { %760 = vmatprep.mubr.msk.bf16.mxu1 %vm974_vm0, %v973_v2  ;;  %v506_v52 = vunpack.c.l.s4 %v976_v51  ;;  %v537_v57 = vunpack.c.l.s4 %v977_v56  ;;  %s148_s3 = scalar_lea.vmem [#allocation5], %s730_s25  ;;  %vm626_vm3 = vcmask 257024   ;;  %s1142_s13 = scalar_lea.hbm %s1192_s1, %s741_s2 }
  0x3d   : > { %s643_s4 = sshll.u32 %s148_s3, 4  ;;  %s629_s9 = scalar_lea.sflag [#allocation4], %s1101_s24  ;;  %s1144_s4 = int_to_ptr.vmem [resolvable:$true] %s643_s4 }
  0x3e   : > { %158 = vrot.lane.b32.xlu0 %v732_v1, %s972_s29  ;;  %v507_v54 = vunpack.c.0.s8 %v506_v52  ;;  %v538_v61 = vunpack.c.0.s8 %v537_v57  ;;  %s886_s15 = scalar_lea.vmem %s1144_s4, 64  ;;  %p1201_p9 = scmp.ne.s32.totalorder %s1196_s19, 0 }
  0x3f   : > { %p887_p8 = scmp.ne.s32.totalorder %s1144_s4, %s886_s15  ;;  %s979_s16 = smov [#allocation5]  }
  0x40   : > { %v510_v59 = vsub.s32 %v507_v54, %v509_v55  ;;  %s890_s17 = sshll.u32 %s979_s16, 4  ;;  %s891_s17 = int_to_ptr.vmem [resolvable:$false] %s890_s17 }
  0x41   : > { %p888_p11 = pnand %p887_p8, %p1201_p9  ;;  %s892_s22 = scalar_lea.vmem %s891_s17, 128 }
  0x42   : > { %p893_p7 = scmp.lt.s32.totalorder %s1144_s4, %s891_s17  ;;  %p894_p13 = scmp.lt.s32.totalorder %s892_s22, %s886_s15 }
  0x43   : > { %p889_p0 = pneg %p888_p11 }
  0x44   : > { %p895_p3 = por %p894_p13, %p893_p7 }
  0x46   : > { %p896_p6 = pnand %p895_p3, %p889_p0 }
  0xac   : > { %v153_v3 = vpop.permute.xlu0 %152 }
  0xad   : > { %v733_v4 = vcombine.low %v153_v3, %v153_v3 }
  0xaf   : > { %160 = vrot.lane.b32.xlu1 %v733_v4, %s972_s29 }
  0xb0   : > { %v159_v5 = vpop.permute.xlu0 %158 }
  0xd2   : > { %164 = vxpose.xlu1.c.b16.start.end [1/1] (short) (narrow) %v159_v5, 16 }
 0x121   : > { %v161_v6 = vpop.permute.xlu1 %160 }
 0x122   : > { %180 = vxpose.xlu0.c.b16.start.end [1/1] (short) (narrow) %v161_v6, 16 }
 0x138   : > { %v172_v7 = vpop.trf.xlu1 }
 0x139   : > { %753 = vmatpush3.bf16.msra.mxu0 %v172_v7 }
 0x13a   : > { %764 = vmatprep.subr.bf16.mxu0 %v973_v2 }
 0x13c   : > { %755 = vmatmul.mubr.msk.bf16.vlgmr.msra.gmra.mrb[0].mxu0 %vm196_vm1, %v150_v0 }
 0x13d   : > { %766 = vmatprep.mubr.msk.bf16.mxu0 %vm974_vm0, %v973_v2 }
 0x188   : > { %v188_v8 = vpop.trf.xlu0 }
 0x189   : > { %759 = vmatpush3.bf16.msra.mxu1 %v188_v8 }
 0x18a   : > { %770 = vmatprep.subr.bf16.mxu1 %v973_v2 }
 0x18c   : > { %761 = vmatmul.mubr.msk.bf16.vlgmr.msra.gmra.mrb[0].mxu1 %vm196_vm1, %v153_v3 }
 0x18d   : > { %772 = vmatprep.mubr.msk.bf16.mxu1 %vm974_vm0, %v973_v2 }
 0x20f   : > { %v234_v9 = vpop.f32.mrb[0].mxu0 }
 0x210   : > { %v284_v10 = vsel %vm283_vm2, %v234_v9, -inf  ;;  %v756_v11 = vpop.f32.mrb[1].mxu0 }
 0x211   : > { %285 = vmax.xlane.f32.xlu0 %v284_v10  ;;  %v237_v12 = vpop.f32.mrb[2].mxu0 }
 0x212   : > { %v757_v13 = vpop.f32.mrb[3].mxu0 }
 0x227   : > { %308 = vrot.lane.b32.xlu0 %v732_v1, %s975_s18  ;;  %v541_v1 = vsub.s32 %v538_v61, %v509_v55 }
 0x25f   : > { %v277_v14 = vpop.f32.mrb[0].mxu1 }
 0x260   : > { %v762_v15 = vpop.f32.mrb[1].mxu1  ;;  %v287_v16 = vsel %vm283_vm2, %v277_v14, -inf }
 0x261   : > { %v280_v17 = vpop.f32.mrb[2].mxu1  ;;  %288 = vmax.xlane.f32.xlu1 %v287_v16 }
 0x262   : > { %v763_v18 = vpop.f32.mrb[3].mxu1 }
 0x272   : > { %310 = vrot.lane.b32.xlu1 %v733_v4, %s975_s18 }
 0x29e   : > { %v286_v19 = vpop.xlane.xlu0 %285 }
 0x29f   : > { %v290_v20 = vsub.f32 %v234_v9, %v286_v19 }
 0x2a1   : > { %v292_v21 = vmul.f32 1.442695, %v290_v20 }
 0x2a2   : > { %v309_v30 = vpop.permute.xlu0 %308 }
 0x2a3   : > { %848 = vpow2.f32 %v292_v21 }
 0x2ad   : > { %v849_v22 = vpop.eup %848 }
 0x2ae   : > { %v296_v23 = vsel %vm283_vm2, %v849_v22, 0.0 }
 0x2af   : > { %297 = vadd.xlane.f32.xlu1 %v296_v23 }
 0x2ee   : > { %v289_v24 = vpop.xlane.xlu1 %288 }
 0x2ef   : > { %v291_v25 = vsub.f32 %v277_v14, %v289_v24 }
 0x2f1   : > { %v294_v26 = vmul.f32 1.442695, %v291_v25 }
 0x2f2   : > { %v311_v27 = vpop.permute.xlu1 %310 }
 0x2f3   : > { %850 = vpow2.f32 %v294_v26  ;;  %330 = vxpose.xlu1.c.b16.start.end [1/1] (short) (narrow) %v311_v27, 16 }
 0x2fd   : > { %v851_v28 = vpop.eup %850 }
 0x2fe   : > { %v299_v29 = vsel %vm283_vm2, %v851_v28, 0.0 }
 0x2ff   : > { %300 = vadd.xlane.f32.xlu0 %v299_v29 }
 0x32c   : > { %314 = vxpose.xlu0.c.b16.start.end [1/1] (short) (narrow) %v309_v30, 16 }
 0x33c   : > { %v298_v31 = vpop.xlane.xlu1 %297 }
 0x33d   : > { %852 = vrcp.f32 %v298_v31 }
 0x347   : > { %v853_v32 = vpop.eup %852 }
 0x348   : > { %v304_v33 = vmul.f32 %v853_v32, %v849_v22 }
 0x34a   : > { %v306_v34 = vpack.c.bf16 %v304_v33, %v304_v33 }
 0x34c   : > { %v350_v35 = vsel %vm283_vm2, %v306_v34, 0 }
 0x34d   : > { %765 = vmatpush3.bf16.xpose.msra.mxu0 %v350_v35 }
 0x359   : > { %v338_v42 = vpop.trf.xlu1 }
 0x38c   : > { %v301_v36 = vpop.xlane.xlu0 %300 }
 0x38d   : > { %854 = vrcp.f32 %v301_v36 }
 0x392   : > { %v322_v37 = vpop.trf.xlu0 }
 0x393   : > { %767 = vmatmul.mubr.msk.bf16.vlgmr.msra.gmra.mrb[4].mxu0 %vm283_vm2, %v322_v37 }
 0x397   : > { %v855_v38 = vpop.eup %854 }
 0x398   : > { %v305_v39 = vmul.f32 %v855_v38, %v851_v28 }
 0x39a   : > { %v307_v40 = vpack.c.bf16 %v305_v39, %v305_v39 }
 0x39c   : > { %v397_v41 = vsel %vm283_vm2, %v307_v40, 0 }
 0x39d   : > { %771 = vmatpush3.bf16.xpose.msra.mxu1 %v397_v41 }
 0x3a4   : > { %773 = vmatmul.mubr.msk.bf16.vlgmr.msra.gmra.mrb[4].mxu1 %vm283_vm2, %v338_v42 }
 0x466   : > { %v386_v43 = vpop.f32.mrb[4].mxu0 }
 0x467   : > { %440 = vxpose.xlu0.b32.start [1/2] (short) (narrow) %v386_v43, 8  ;;  %v768_v44 = vpop.f32.mrb[5].mxu0 }
 0x468   : > { %v389_v45 = vpop.f32.mrb[6].mxu0 }
 0x469   : > { %v769_v46 = vpop.f32.mrb[7].mxu0 }
 0x46b   : > { %441 = vxpose.xlu0.b32.end [2/2] (short) (narrow) %v389_v45, 8 }
 0x477   : > { %v433_v47 = vpop.f32.mrb[4].mxu1 }
 0x478   : > { %472 = vxpose.xlu1.b32.start [1/2] (short) (narrow) %v433_v47, 8  ;;  %v774_v48 = vpop.f32.mrb[5].mxu1 }
 0x479   : > { %v436_v49 = vpop.f32.mrb[6].mxu1 }
 0x47a   : > { %v775_v50 = vpop.f32.mrb[7].mxu1 }
 0x47c   : > { %473 = vxpose.xlu1.b32.end [2/2] (short) (narrow) %v436_v49, 8 }
 0x4e7   : > { %v456_v58 = vpop.trf.xlu0 }
 0x4e8   : > { %v504_v60 = vcombine.high %v456_v58, %v973_v2  ;;  %v511_v62 = vrot.slane %v456_v58, %v510_v59 }
 0x4ea   : > { %v518_v0 = vrot.slane %v504_v60, %v510_v59 }
 0x4f8   : > { %v488_v63 = vpop.trf.xlu1 }
 0x4f9   : > { %v519_v3 = vcombine.high %v488_v63, %v973_v2  ;;  %v526_v4 = vrot.slane %v488_v63, %v510_v59 }
 0x4fb   : > { %v533_v5 = vrot.slane %v519_v3, %v510_v59  ;;  %v534_v6 = vcombine.low %v511_v62, %v526_v4  ;;  %v535_v7 = vcombine.high %v511_v62, %v526_v4 }
 0x4fd   : > { %v542_v8 = vrot.slane %v534_v6, %v541_v1  ;;  %v549_v9 = vrot.slane %v535_v7, %v541_v1  ;;  %v550_v10 = vcombine.low %v518_v0, %v533_v5  ;;  %v551_v11 = vcombine.high %v518_v0, %v533_v5 }
 0x4ff   : > { %v558_v12 = vrot.slane %v550_v10, %v541_v1  ;;  %v565_v13 = vrot.slane %v551_v11, %v541_v1  ;;  %v570_v14 = vcombine.low %v542_v8, %v549_v9  ;;  %v738_v15 = vcombine.high %v542_v8, %v549_v9 }
 0x501   : > { %v577_v16 = vrot.slane %v570_v14, %v510_v59  ;;  %v585_v17 = vrot.slane %v738_v15, %v510_v59  ;;  %v586_v18 = vcombine.low %v558_v12, %v565_v13  ;;  %v739_v19 = vcombine.high %v558_v12, %v565_v13 }
 0x503   : > { %v593_v20 = vrot.slane %v586_v18, %v510_v59  ;;  %v601_v2 = vrot.slane %v739_v19, %v510_v59  ;;  %v602_v21 = vcombine.low %v577_v16, %v585_v17 }
 0x505   : > { %v610_v22 = vcombine.low %v593_v20, %v601_v2  ;;  %v609_v23 = vrot.slane %v602_v21, %v541_v1 }
 0x507   : > { %v617_v24 = vrot.slane %v610_v22, %v541_v1 }
 0x509   : > { %v619_v25 = vcombine.high %v609_v23, %v617_v24  ;;  %v618_v26 = vcombine.low %v609_v23, %v617_v24 }
 0x50b   : > { %621 = vrot.lane.b32.xlu0 %v619_v25, %s978_s30 }
 0x57d   : > { %v622_v27 = vpop.permute.xlu0 %621 }
 0x57e   : > { %v624_v28 = vsel %vm196_vm1, %v618_v26, %v622_v27 }
 0x57f   : > { %v625_v29 = vpack.c.bf16 %v624_v28, %v624_v28 }
 0x581   : > { %627 = vst.msk [vmem:[%s148_s3] sm:$0xf] %vm626_vm3, %v625_v29 }
 0x582   : > { %899 = shalt.err (!%p896_p6)
}
 0x583   : > { %s900_s23 = scalar_lea.hbm %s1142_s13, 64  ;;  %s904_s26 = scalar_lea.hbm %s1192_s1, 128 }
 0x584   : > { %p901_p4 = scmp.ne.s32.totalorder %s1142_s13, %s900_s23  ;;  %p905_p1 = scmp.lt.u32.totalorder %s1142_s13, %s1192_s1 }
 0x585   : > { %p906_p2 = scmp.lt.u32.totalorder %s904_s26, %s900_s23  ;;  %p908_p8 = scmp.lt.u32.totalorder %s900_s23, %s1142_s13 }
 0x586   : > { %p902_p10 = pnand %p901_p4, %p1201_p9 }
 0x587   : > { %p907_p5 = por %p906_p2, %p905_p1 }
 0x588   : > { %p903_p12 = pneg %p902_p10 }
 0x589   : > { %p909_p11 = por %p908_p8, %p907_p5 }
 0x58b   : > { %p910_p0 = pnand %p909_p11, %p903_p12 }
 0x58d   : > { %913 = shalt.err (!%p910_p0)
}
 0x58e   : > { %778 = dma.vmem_to_hbm [thread:$0]  (%p1201_p9), %s1144_s4, 64, %s1142_s13, %s629_s9  }
 0x58f PF: > { %s655_s29 = sand.u32 1, %s948_s6   ;;  %p1202_p7 = scmp.ne.s32.totalorder %s1197_s21, 0 }
 0x590   : > { %p1203_p13 = scmp.ge.s32.totalorder %s968_s11, 2  ;;  %s656_s18 = scalar_lea.sflag [#allocation4], %s655_s29 }
 0x592   : > { %p785_p3 = pnand %p1203_p13, %p1202_p7 }
 0x594   : > { %943 = dma.done.wait (!%p785_p3), %s656_s18, 64  }
 0x595   : > { %945 = vsyncadd (!%p785_p3), %s656_s18, 4294967232  ;;  %s17_s11 = sadd.s32 1, %s968_s11   ;;  %s1204_s6 = smov %s952_s7 }
 0x596   : > { %p14_p6 = scmp.ge.s32.totalorder %s17_s11, 4   ;;  %s1205_s7 = smov %s956_s8 }
 0x597   : > { %s1206_s8 = smov %s1046_s20  ;;  %s1207_s9 = smov %s964_s10 }
 0x598   : > { %s1208_s10 = smov %s1210_s14  ;;  %16 = sbr.rel (!%p14_p6) target bundleno = 6 (0x6), region = 69 }
 0x59f   :  { %661 = vsyncpa [#allocation3], 1 }
 0x5a0   :  { %663 = vsyncpa [#allocation3 + $0x1], 1 }
 0x5a1   :  { %664 = vsyncpa [#allocation4], 1 }
 0x5a2   :  { %666 = vsyncpa [#allocation4 + $0x1], 1 }

// kernel: nlp_embedder_forward.14
= control target key start
LH: loop header
LB: loop body
LE: loop exit
PB: predicated region body
PF: predicated region fallthrough
CT: control target
= control target key end

     0   :  { %11 = vsyncpa [#allocation4], 0  ;;  %s644_s0 = inlined_call_operand.hbm [shape: bf16[16,32], index: 0, kind: input, shape index: {}]   ;;  %s645_s1 = inlined_call_operand.hbm [shape: bf16[32,32], index: 1, kind: input, shape index: {}]   ;;  %s646_s2 = inlined_call_operand.hbm [shape: f32[1,32], index: 2, kind: input, shape index: {}]   ;;  %s647_s3 = inlined_call_operand.hbm [shape: bf16[16,32], index: 3, kind: input, shape index: {}]   ;;  %s648_s4 = inlined_call_operand.hbm [shape: f32[1,32], index: 4, kind: input, shape index: {}]   ;;  %s649_s5 = inlined_call_operand.hbm [shape: f32[1,32], index: 5, kind: input, shape index: {}]   ;;  %s650_s6 = inlined_call_operand.hbm [shape: bf16[16,32], index: 6, kind: output, shape index: {}]  }
   0x1   :  { %12 = vsyncpa [#allocation7], 0 }
   0x2   :  { %13 = vsyncpa [#allocation10], 0 }
   0x3   :  { %14 = vsyncpa [#allocation13], 0 }
   0x4   :  { %15 = vsyncpa [#allocation5], 0  ;;  %s486_s21 = smov [#allocation6]   ;;  %s487_s23 = smov [#allocation9]  }
   0x5   :  { %s33_s22 = sshll.u32 %s486_s21, 4  ;;  %s55_s24 = sshll.u32 %s487_s23, 4  ;;  %s34_s22 = int_to_ptr.vmem [resolvable:$true] %s33_s22  ;;  %s532_s24 = int_to_ptr.vmem [resolvable:$true] %s55_s24 }
   0x6   :  { %s322_s27 = scalar_lea.hbm %s645_s1, 256 }
   0x7   :  { %p323_p0 = scmp.ne.s32.totalorder %s645_s1, %s322_s27  ;;  %p326_p1 = scmp.lt.u32.totalorder %s322_s27, %s645_s1 }
   0x9   :  { %p328_p2 = pnand %p326_p1, %p323_p0 }
   0xb   :  { %331 = shalt.err (!%p328_p2)
}
   0xc   :  { %s332_s8 = scalar_lea.vmem %s34_s22, 256  ;;  %p337_p4 = scmp.lt.s32.totalorder %s34_s22, %s34_s22 }
   0xd   :  { %p333_p3 = scmp.ne.s32.totalorder %s34_s22, %s332_s8  ;;  %p338_p5 = scmp.lt.s32.totalorder %s332_s8, %s332_s8 }
   0xf   :  { %p339_p6 = por %p338_p5, %p337_p4 }
  0x11   :  { %p340_p7 = pnand %p339_p6, %p333_p3 }
  0x13   :  { %343 = shalt.err (!%p340_p7)
}
  0x14   :  { %s488_s9 = smov 64   ;;  %s489_s10 = smov 4  }
  0x15   :  { %39 = dma.hbm_to_vmem [thread:$0]  %s645_s1, 256, %s34_s22, [#allocation7], %s488_s9, %s488_s9, %s489_s10  }
  0x16   :  { %s344_s15 = scalar_lea.hbm %s647_s3, 128 }
  0x17   :  { %p345_p8 = scmp.ne.s32.totalorder %s647_s3, %s344_s15  ;;  %p348_p9 = scmp.lt.u32.totalorder %s344_s15, %s647_s3 }
  0x19   :  { %p350_p10 = pnand %p348_p9, %p345_p8 }
  0x1b   :  { %353 = shalt.err (!%p350_p10)
}
  0x1c   :  { %s354_s20 = scalar_lea.vmem %s532_s24, 128  ;;  %p359_p12 = scmp.lt.s32.totalorder %s532_s24, %s532_s24 }
  0x1d   :  { %p355_p11 = scmp.ne.s32.totalorder %s532_s24, %s354_s20  ;;  %p360_p13 = scmp.lt.s32.totalorder %s354_s20, %s354_s20 }
  0x1f   :  { %p361_p0 = por %p360_p13, %p359_p12 }
  0x21   :  { %p362_p1 = pnand %p361_p0, %p355_p11 }
  0x23   :  { %365 = shalt.err (!%p362_p1)
}
  0x24   :  { %61 = dma.hbm_to_vmem [thread:$0]  %s647_s3, 128, %s532_s24, [#allocation10], %s488_s9, %s488_s9, %s489_s10  }
  0x25   :  { %s490_s22 = smov [#allocation3]   ;;  %s491_s25 = smov [#allocation8]  }
  0x26   :  { %s21_s23 = sshll.u32 %s490_s22, 4  ;;  %s46_s26 = sshll.u32 %s491_s25, 4  ;;  %s22_s23 = int_to_ptr.vmem [resolvable:$true] %s21_s23  ;;  %s47_s26 = int_to_ptr.vmem [resolvable:$true] %s46_s26 }
  0x27   :  { %s366_s29 = scalar_lea.hbm %s644_s0, 128 }
  0x28   :  { %p367_p2 = scmp.ne.s32.totalorder %s644_s0, %s366_s29  ;;  %p370_p3 = scmp.lt.u32.totalorder %s366_s29, %s644_s0 }
  0x2a   :  { %p372_p4 = pnand %p370_p3, %p367_p2 }
  0x2c   :  { %375 = shalt.err (!%p372_p4)
}
  0x2d   :  { %s376_s3 = scalar_lea.vmem %s22_s23, 128  ;;  %p381_p6 = scmp.lt.s32.totalorder %s22_s23, %s22_s23 }
  0x2e   :  { %p377_p5 = scmp.ne.s32.totalorder %s22_s23, %s376_s3  ;;  %p382_p7 = scmp.lt.s32.totalorder %s376_s3, %s376_s3 }
  0x30   :  { %p383_p8 = por %p382_p7, %p381_p6 }
  0x32   :  { %p384_p9 = pnand %p383_p8, %p377_p5 }
  0x34   :  { %387 = shalt.err (!%p384_p9)
}
  0x35   :  { %27 = dma.hbm_to_vmem [thread:$0]  %s644_s0, 128, %s22_s23, [#allocation4], %s488_s9, %s488_s9, %s489_s10  }
  0x36   :  { %s388_s15 = scalar_lea.hbm %s646_s2, 16 }
  0x37   :  { %p389_p10 = scmp.ne.s32.totalorder %s646_s2, %s388_s15  ;;  %p392_p11 = scmp.lt.u32.totalorder %s388_s15, %s646_s2 }
  0x39   :  { %p394_p12 = pnand %p392_p11, %p389_p10 }
  0x3b   :  { %397 = shalt.err (!%p394_p12)
}
  0x3c   :  { %s398_s20 = scalar_lea.vmem %s47_s26, 16  ;;  %s402_s1 = scalar_lea.vmem %s47_s26, 32 }
  0x3d   :  { %p399_p13 = scmp.ne.s32.totalorder %s47_s26, %s398_s20  ;;  %p403_p0 = scmp.lt.s32.totalorder %s47_s26, %s47_s26 }
  0x3e   :  { %p404_p1 = scmp.lt.s32.totalorder %s402_s1, %s398_s20 }
  0x40   :  { %p405_p2 = por %p404_p1, %p403_p0 }
  0x42   :  { %p406_p3 = pnand %p405_p2, %p399_p13 }
  0x44   :  { %409 = shalt.err (!%p406_p3)
}
  0x45   :  { %49 = dma.hbm_to_vmem [thread:$0]  %s646_s2, 16, %s47_s26, [#allocation7]  }
  0x46   :  { %s492_s22 = smov [#allocation11]   ;;  %s493_s25 = smov [#allocation12]  }
  0x47   :  { %s68_s23 = sshll.u32 %s492_s22, 4  ;;  %s78_s27 = sshll.u32 %s493_s25, 4  ;;  %s69_s23 = int_to_ptr.vmem [resolvable:$true] %s68_s23  ;;  %s79_s27 = int_to_ptr.vmem [resolvable:$true] %s78_s27 }
  0x48   :  { %s410_s30 = scalar_lea.hbm %s648_s4, 16 }
  0x49   :  { %p411_p4 = scmp.ne.s32.totalorder %s648_s4, %s410_s30  ;;  %p414_p5 = scmp.lt.u32.totalorder %s410_s30, %s648_s4 }
  0x4b   :  { %p416_p6 = pnand %p414_p5, %p411_p4 }
  0x4d   :  { %419 = shalt.err (!%p416_p6)
}
  0x4e   :  { %s420_s2 = scalar_lea.vmem %s69_s23, 16  ;;  %s424_s26 = scalar_lea.vmem %s69_s23, 32 }
  0x4f   :  { %p421_p7 = scmp.ne.s32.totalorder %s69_s23, %s420_s2  ;;  %p425_p8 = scmp.lt.s32.totalorder %s69_s23, %s69_s23 }
  0x50   :  { %p426_p9 = scmp.lt.s32.totalorder %s424_s26, %s420_s2 }
  0x52   :  { %p427_p10 = por %p426_p9, %p425_p8 }
  0x54   :  { %p428_p11 = pnand %p427_p10, %p421_p7 }
  0x56   :  { %431 = shalt.err (!%p428_p11)
}
  0x57   :  { %71 = dma.hbm_to_vmem [thread:$0]  %s648_s4, 16, %s69_s23, [#allocation10]  }
  0x58   :  { %s432_s15 = scalar_lea.hbm %s649_s5, 16 }
  0x59   :  { %p433_p12 = scmp.ne.s32.totalorder %s649_s5, %s432_s15  ;;  %p436_p13 = scmp.lt.u32.totalorder %s432_s15, %s649_s5 }
  0x5b   :  { %p438_p0 = pnand %p436_p13, %p433_p12 }
  0x5d   :  { %441 = shalt.err (!%p438_p0)
}
  0x5e   :  { %s442_s20 = scalar_lea.vmem %s79_s27, 16  ;;  %s446_s1 = scalar_lea.vmem %s79_s27, 32 }
  0x5f   :  { %p443_p1 = scmp.ne.s32.totalorder %s79_s27, %s442_s20  ;;  %p447_p2 = scmp.lt.s32.totalorder %s79_s27, %s79_s27 }
  0x60   :  { %p448_p3 = scmp.lt.s32.totalorder %s446_s1, %s442_s20 }
  0x62   :  { %p449_p4 = por %p448_p3, %p447_p2 }
  0x64   :  { %p450_p5 = pnand %p449_p4, %p443_p1 }
  0x66   :  { %453 = shalt.err (!%p450_p5)
}
  0x67   :  { %81 = dma.hbm_to_vmem [thread:$0]  %s649_s5, 16, %s79_s27, [#allocation13]  }
  0x68   :  { %476 = dma.done.wait [#allocation4], 128  }
  0x69   :  { %477 = vsyncadd [#allocation4], 4294967168 }
  0x6a   :  { %478 = dma.done.wait [#allocation7], 272  }
  0x6b   :  { %479 = vsyncadd [#allocation7], 4294967024 }
  0x6c   :  { %480 = dma.done.wait [#allocation10], 144  }
  0x6d   :  { %481 = vsyncadd [#allocation10], 4294967152 }
  0x6e   :  { %482 = dma.done.wait [#allocation13], 16  }
  0x6f   :  { %483 = vsyncadd [#allocation13], 4294967280  ;;  %vm105_vm0 = vcmask 261120   ;;  %v494_v0 = vmov 0.0   ;;  %vm495_vm1 = vmmov 0   ;;  %v315_v1 = vld [vmem:[#allocation6] sm:$0xff]  }
  0x70   :  { %106 = vst.msk [vmem:[#allocation2] sm:$0xff] %vm105_vm0, %v494_v0  ;;  %107 = vst.msk [vmem:[#allocation2 + $0x8] sm:$0xff] %vm105_vm0, %v494_v0  ;;  %296 = vmatprep.subr.bf16.mxu0 %v494_v0  ;;  %300 = vmatprep.mubr.msk.bf16.mxu0 %vm495_vm1, %v494_v0  ;;  %v316_v2 = vld [vmem:[#allocation6 + $0x8] sm:$0xff]   ;;  %v317_v3 = vld [vmem:[#allocation3] sm:$0xff]   ;;  %vm255_vm2 = vcmask 257024   ;;  %s496_s5 = smov [#allocation14]  }
  0x71   :  { %297 = vmatpush3.bf16.msra.mxu0 %v315_v1  ;;  %v290_v12 = vld [vmem:[#allocation9] sm:$0xff]   ;;  %v282_v13 = vld [vmem:[#allocation8] ss:$0 sm:$0xff]  ;;  %v283_v41 = vld [vmem:[#allocation11] ss:$0 sm:$0xff]  ;;  %s263_s21 = sshll.u32 %s496_s5, 4  ;;  %s264_s21 = int_to_ptr.vmem [resolvable:$true] %s263_s21 }
  0x72   :  { %298 = vmatprep.subr.bf16.mxu0 %v494_v0  ;;  %v291_v14 = vunpack.c.l.bf16 %v290_v12  ;;  %v292_v17 = vunpack.c.h.bf16 %v290_v12  ;;  %v284_v43 = vld [vmem:[#allocation12] ss:$0 sm:$0xff]  ;;  %s454_s22 = scalar_lea.vmem %s264_s21, 128  ;;  %p459_p7 = scmp.lt.s32.totalorder %s264_s21, %s264_s21 }
  0x73   :  { %p455_p6 = scmp.ne.s32.totalorder %s264_s21, %s454_s22  ;;  %p460_p8 = scmp.lt.s32.totalorder %s454_s22, %s454_s22 }
  0x75   :  { %299 = vmatpush3.bf16.msra.mxu0 %v316_v2  ;;  %p461_p9 = por %p460_p8, %p459_p7 }
  0x77   :  { %v108_v4 = vld [vmem:[#allocation2] sm:$0xff]  ;;  %v109_v6 = vld [vmem:[#allocation2 + $0x8] sm:$0xff]  ;;  %p462_p10 = pnand %p461_p9, %p455_p6 }
  0x78   :  { %301 = vmatmul.mubr.msk.bf16.vlgmr.msra.gmra.mrb[0].mxu0 %vm105_vm0, %v317_v3 }
 0x14b   :  { %v171_v5 = vpop.f32.mrb[0].mxu0 }
 0x14c   :  { %v178_v7 = vadd.f32 %v171_v5, %v108_v4  ;;  %v302_v8 = vpop.f32.mrb[1].mxu0 }
 0x14d   :  { %v174_v9 = vpop.f32.mrb[2].mxu0 }
 0x14e   :  { %180 = vst.msk [vmem:[#allocation2] sm:$0xff] %vm105_vm0, %v178_v7  ;;  %v179_v10 = vadd.f32 %v174_v9, %v109_v6  ;;  %v303_v11 = vpop.f32.mrb[3].mxu0 }
 0x150   :  { %181 = vst.msk [vmem:[#allocation2 + $0x8] sm:$0xff] %vm105_vm0, %v179_v10 }
 0x155   :  { %v185_v15 = vld [vmem:[#allocation2] sm:$0xff] }
 0x156   :  { %v194_v16 = vadd.f32 %v282_v13, %v185_v15 }
 0x157   :  { %v186_v18 = vld [vmem:[#allocation2 + $0x8] sm:$0xff] }
 0x158   :  { %v200_v19 = vadd.f32 %v291_v14, %v194_v16  ;;  %v195_v20 = vadd.f32 %v282_v13, %v186_v18 }
 0x15a   :  { %v202_v21 = vsel %vm105_vm0, %v200_v19, 0.0  ;;  %v201_v22 = vadd.f32 %v292_v17, %v195_v20 }
 0x15b   :  { %203 = vadd.xlane.f32.xlu0 %v202_v21 }
 0x15c   :  { %v205_v23 = vsel %vm105_vm0, %v201_v22, 0.0 }
 0x15f   :  { %206 = vadd.xlane.f32.xlu0 %v205_v23 }
 0x1e8   :  { %v204_v24 = vpop.xlane.xlu0 %203 }
 0x1e9   :  { %v209_v25 = vmul.f32 0.03125, %v204_v24 }
 0x1eb   :  { %v211_v26 = vsub.f32 %v200_v19, %v209_v25 }
 0x1ec   :  { %v207_v27 = vpop.xlane.xlu0 %206 }
 0x1ed   :  { %v210_v28 = vmul.f32 0.03125, %v207_v27  ;;  %v213_v29 = vmul.f32 %v211_v26, %v211_v26 }
 0x1ef   :  { %v212_v30 = vsub.f32 %v201_v22, %v210_v28  ;;  %v215_v31 = vsel %vm105_vm0, %v213_v29, 0.0 }
 0x1f0   :  { %216 = vadd.xlane.f32.xlu1 %v215_v31 }
 0x1f1   :  { %v214_v32 = vmul.f32 %v212_v30, %v212_v30 }
 0x1f3   :  { %v218_v33 = vsel %vm105_vm0, %v214_v32, 0.0 }
 0x1f4   :  { %219 = vadd.xlane.f32.xlu1 %v218_v33 }
 0x27d   :  { %v217_v34 = vpop.xlane.xlu1 %216 }
 0x27e   :  { %v221_v35 = vmul.f32 0.03125, %v217_v34 }
 0x280   :  { %v223_v36 = vadd.f32 1e-12, %v221_v35 }
 0x281   :  { %v220_v37 = vpop.xlane.xlu1 %219 }
 0x282   :  { %318 = vrsqrt.f32 %v223_v36  ;;  %v222_v38 = vmul.f32 0.03125, %v220_v37 }
 0x284   :  { %v224_v39 = vadd.f32 1e-12, %v222_v38 }
 0x286   :  { %320 = vrsqrt.f32 %v224_v39 }
 0x28c   :  { %v319_v40 = vpop.eup %318 }
 0x28d   :  { %v227_v42 = vmul.f32 %v319_v40, %v211_v26 }
 0x28f   :  { %v236_v44 = vmul.f32 %v283_v41, %v227_v42 }
 0x290   :  { %v321_v45 = vpop.eup %320 }
 0x291   :  { %v228_v46 = vmul.f32 %v321_v45, %v212_v30  ;;  %v245_v47 = vadd.f32 %v284_v43, %v236_v44 }
 0x293   :  { %v237_v48 = vmul.f32 %v283_v41, %v228_v46  ;;  %v287_v49 = vpack.c.bf16 %v245_v47, %v245_v47 }
 0x295   :  { %v246_v50 = vadd.f32 %v284_v43, %v237_v48  ;;  %256 = vst.msk [vmem:[#allocation14] sm:$0xf] %vm255_vm2, %v287_v49 }
 0x297   :  { %v288_v51 = vpack.c.bf16 %v246_v50, %v246_v50 }
 0x299   :  { %257 = vst.msk [vmem:[#allocation14 + $0x4] sm:$0xf] %vm255_vm2, %v288_v51 }
 0x29a   :  { %465 = shalt.err (!%p462_p10)
}
 0x29b   :  { %s466_s27 = scalar_lea.hbm %s650_s6, 128 }
 0x29c   :  { %p467_p11 = scmp.ne.s32.totalorder %s650_s6, %s466_s27  ;;  %p470_p12 = scmp.lt.u32.totalorder %s466_s27, %s650_s6 }
 0x29e   :  { %p472_p13 = pnand %p470_p12, %p467_p11 }
 0x2a0   :  { %475 = shalt.err (!%p472_p13)
}
 0x2a1   :  { %269 = dma.vmem_to_hbm [thread:$0]  %s264_s21, 128, %s650_s6, [#allocation5], %s488_s9, %s488_s9, %s489_s10  }
 0x2a2   :  { %484 = dma.done.wait [#allocation5], 128  }
 0x2a3   :  { %485 = vsyncadd [#allocation5], 4294967168 }
 0x2a4   :  { %273 = vsyncpa [#allocation4], 1 }
 0x2a5   :  { %274 = vsyncpa [#allocation7], 1 }
 0x2a6   :  { %275 = vsyncpa [#allocation10], 1 }
 0x2a7   :  { %276 = vsyncpa [#allocation13], 1 }
 0x2a8   :  { %277 = vsyncpa [#allocation5], 1 }

// kernel: nlp_embedder_forward.15
= control target key start
LH: loop header
LB: loop body
LE: loop exit
PB: predicated region body
PF: predicated region fallthrough
CT: control target
= control target key end

     0   :  { %8 = vsyncpa [#allocation4], 0  ;;  %s415_s0 = inlined_call_operand.hbm [shape: bf16[16,32], index: 0, kind: input, shape index: {}]   ;;  %s416_s1 = inlined_call_operand.hbm [shape: bf16[32,64], index: 1, kind: input, shape index: {}]   ;;  %s417_s2 = inlined_call_operand.hbm [shape: f32[1,64], index: 2, kind: input, shape index: {}]   ;;  %s418_s3 = inlined_call_operand.hbm [shape: bf16[16,64], index: 3, kind: output, shape index: {}]  }
   0x1   :  { %9 = vsyncpa [#allocation7], 0 }
   0x2   :  { %10 = vsyncpa [#allocation5], 0  ;;  %s319_s12 = smov [#allocation6]   ;;  %s320_s14 = smov [#allocation3]  }
   0x3   :  { %s28_s13 = sshll.u32 %s319_s12, 4  ;;  %s16_s15 = sshll.u32 %s320_s14, 4  ;;  %s29_s13 = int_to_ptr.vmem [resolvable:$true] %s28_s13  ;;  %s347_s15 = int_to_ptr.vmem [resolvable:$true] %s16_s15 }
   0x4   :  { %s225_s18 = scalar_lea.hbm %s416_s1, 256 }
   0x5   :  { %p226_p0 = scmp.ne.s32.totalorder %s416_s1, %s225_s18  ;;  %p229_p1 = scmp.lt.u32.totalorder %s225_s18, %s416_s1 }
   0x7   :  { %p231_p2 = pnand %p229_p1, %p226_p0 }
   0x9   :  { %234 = shalt.err (!%p231_p2)
}
   0xa   :  { %s235_s23 = scalar_lea.vmem %s29_s13, 256  ;;  %p240_p4 = scmp.lt.s32.totalorder %s29_s13, %s29_s13 }
   0xb   :  { %p236_p3 = scmp.ne.s32.totalorder %s29_s13, %s235_s23  ;;  %p241_p5 = scmp.lt.s32.totalorder %s235_s23, %s235_s23 }
   0xd   :  { %p242_p6 = por %p241_p5, %p240_p4 }
   0xf   :  { %p243_p7 = pnand %p242_p6, %p236_p3 }
  0x11   :  { %246 = shalt.err (!%p243_p7)
}
  0x12   :  { %s321_s24 = smov 64   ;;  %s322_s25 = smov 4  }
  0x13   :  { %34 = dma.hbm_to_vmem [thread:$0]  %s416_s1, 256, %s29_s13, [#allocation7], %s321_s24, %s321_s24, %s322_s25  }
  0x14   :  { %s247_s30 = scalar_lea.hbm %s415_s0, 128 }
  0x15   :  { %p248_p8 = scmp.ne.s32.totalorder %s415_s0, %s247_s30  ;;  %p251_p9 = scmp.lt.u32.totalorder %s247_s30, %s415_s0 }
  0x17   :  { %p253_p10 = pnand %p251_p9, %p248_p8 }
  0x19   :  { %256 = shalt.err (!%p253_p10)
}
  0x1a   :  { %s257_s8 = scalar_lea.vmem %s347_s15, 128  ;;  %p262_p12 = scmp.lt.s32.totalorder %s347_s15, %s347_s15 }
  0x1b   :  { %p258_p11 = scmp.ne.s32.totalorder %s347_s15, %s257_s8  ;;  %p263_p13 = scmp.lt.s32.totalorder %s257_s8, %s257_s8 }
  0x1d   :  { %p264_p0 = por %p263_p13, %p262_p12 }
  0x1f   :  { %p265_p1 = pnand %p264_p0, %p258_p11 }
  0x21   :  { %268 = shalt.err (!%p265_p1)
}
  0x22   :  { %22 = dma.hbm_to_vmem [thread:$0]  %s415_s0, 128, %s347_s15, [#allocation4], %s321_s24, %s321_s24, %s322_s25  }
  0x23   :  { %s323_s10 = smov [#allocation8]   ;;  %s269_s14 = scalar_lea.hbm %s417_s2, 16 }
  0x24   :  { %s41_s11 = sshll.u32 %s323_s10, 4  ;;  %p270_p2 = scmp.ne.s32.totalorder %s417_s2, %s269_s14  ;;  %s42_s11 = int_to_ptr.vmem [resolvable:$true] %s41_s11 }
  0x25   :  { %p273_p3 = scmp.lt.u32.totalorder %s269_s14, %s417_s2 }
  0x27   :  { %p275_p4 = pnand %p273_p3, %p270_p2 }
  0x29   :  { %278 = shalt.err (!%p275_p4)
}
  0x2a   :  { %s279_s20 = scalar_lea.vmem %s42_s11, 16  ;;  %s283_s0 = scalar_lea.vmem %s42_s11, 32 }
  0x2b   :  { %p280_p5 = scmp.ne.s32.totalorder %s42_s11, %s279_s20  ;;  %p284_p6 = scmp.lt.s32.totalorder %s42_s11, %s42_s11 }
  0x2c   :  { %p285_p7 = scmp.lt.s32.totalorder %s283_s0, %s279_s20 }
  0x2e   :  { %p286_p8 = por %p285_p7, %p284_p6 }
  0x30   :  { %p287_p9 = pnand %p286_p8, %p280_p5 }
  0x32   :  { %290 = shalt.err (!%p287_p9)
}
  0x33   :  { %44 = dma.hbm_to_vmem [thread:$0]  %s417_s2, 16, %s42_s11, [#allocation7]  }
  0x34   :  { %313 = dma.done.wait [#allocation4], 128  }
  0x35   :  { %314 = vsyncadd [#allocation4], 4294967168 }
  0x36   :  { %315 = dma.done.wait [#allocation7], 272  }
  0x37   :  { %316 = vsyncadd [#allocation7], 4294967024  ;;  %vm59_vm0 = vcmask 523264   ;;  %v324_v0 = vmov 0.0   ;;  %vm325_vm1 = vmmov 0   ;;  %v218_v1 = vld [vmem:[#allocation6] sm:$0xff]  }
  0x38   :  { %60 = vst.msk [vmem:[#allocation2] sm:$0xff] %vm59_vm0, %v324_v0  ;;  %61 = vst.msk [vmem:[#allocation2 + $0x8] sm:$0xff] %vm59_vm0, %v324_v0  ;;  %202 = vmatprep.subr.bf16.mxu0 %v324_v0  ;;  %206 = vmatprep.mubr.msk.bf16.mxu0 %vm325_vm1, %v324_v0  ;;  %v219_v2 = vld [vmem:[#allocation6 + $0x8] sm:$0xff]   ;;  %v220_v3 = vld [vmem:[#allocation3] sm:$0xff]   ;;  %vm87_vm2 = vcmask 261120   ;;  %vm169_vm3 = vcmask 519168  }
  0x39   :  { %203 = vmatpush3.bf16.msra.mxu0 %v218_v1  ;;  %v194_v12 = vld [vmem:[#allocation8] ss:$0 sm:$0xff]  ;;  %s326_s2 = smov [#allocation9]  }
  0x3a   :  { %204 = vmatprep.subr.bf16.mxu0 %v324_v0  ;;  %s177_s22 = sshll.u32 %s326_s2, 4  ;;  %s178_s22 = int_to_ptr.vmem [resolvable:$true] %s177_s22 }
  0x3b   :  { %s291_s23 = scalar_lea.vmem %s178_s22, 128  ;;  %p296_p11 = scmp.lt.s32.totalorder %s178_s22, %s178_s22 }
  0x3c   :  { %p292_p10 = scmp.ne.s32.totalorder %s178_s22, %s291_s23  ;;  %p297_p12 = scmp.lt.s32.totalorder %s291_s23, %s291_s23 }
  0x3d   :  { %205 = vmatpush3.bf16.msra.mxu0 %v219_v2 }
  0x3e   :  { %p298_p13 = por %p297_p12, %p296_p11 }
  0x3f   :  { %v62_v4 = vld [vmem:[#allocation2] sm:$0xff]  ;;  %v63_v6 = vld [vmem:[#allocation2 + $0x8] sm:$0xff] }
  0x40   :  { %207 = vmatmul.mubr.msk.bf16.vlgmr.msra.gmra.mrb[0].mxu0 %vm87_vm2, %v220_v3  ;;  %p299_p0 = pnand %p298_p13, %p292_p10 }
 0x113   :  { %v125_v5 = vpop.f32.mrb[0].mxu0 }
 0x114   :  { %v132_v7 = vadd.f32 %v125_v5, %v62_v4  ;;  %v208_v8 = vpop.f32.mrb[1].mxu0 }
 0x115   :  { %v128_v9 = vpop.f32.mrb[2].mxu0 }
 0x116   :  { %135 = vst.msk [vmem:[#allocation2] sm:$0xff] %vm59_vm0, %v132_v7  ;;  %v133_v10 = vadd.f32 %v128_v9, %v63_v6  ;;  %v209_v11 = vpop.f32.mrb[3].mxu0 }
 0x118   :  { %136 = vst.msk [vmem:[#allocation2 + $0x8] sm:$0xff] %vm59_vm0, %v133_v10 }
 0x11d   :  { %v140_v13 = vld [vmem:[#allocation2] sm:$0xff] }
 0x11e   :  { %v149_v14 = vadd.f32 %v194_v12, %v140_v13 }
 0x11f   :  { %v141_v15 = vld [vmem:[#allocation2 + $0x8] sm:$0xff] }
 0x120   :  { %v150_v16 = vadd.f32 %v194_v12, %v141_v15  ;;  %v153_v17 = vmul.f32 0.70710677, %v149_v14  ;;  %v151_v20 = vmul.f32 0.5, %v149_v14 }
 0x122   :  { %v154_v18 = vmul.f32 0.70710677, %v150_v16  ;;  %221 = verf.f32 %v153_v17  ;;  %v152_v23 = vmul.f32 0.5, %v150_v16 }
 0x124   :  { %223 = verf.f32 %v154_v18 }
 0x12c   :  { %v222_v19 = vpop.eup %221 }
 0x12d   :  { %v157_v21 = vadd.f32 1.0, %v222_v19 }
 0x12e   :  { %v224_v22 = vpop.eup %223 }
 0x12f   :  { %v158_v24 = vadd.f32 1.0, %v224_v22  ;;  %v159_v25 = vmul.f32 %v157_v21, %v151_v20 }
 0x131   :  { %v160_v26 = vmul.f32 %v158_v24, %v152_v23  ;;  %v197_v27 = vpack.c.bf16 %v159_v25, %v159_v25 }
 0x133   :  { %v198_v28 = vpack.c.bf16 %v160_v26, %v160_v26  ;;  %170 = vst.msk [vmem:[#allocation9] sm:$0xf] %vm169_vm3, %v197_v27 }
 0x135   :  { %171 = vst.msk [vmem:[#allocation9 + $0x4] sm:$0xf] %vm169_vm3, %v198_v28 }
 0x136   :  { %302 = shalt.err (!%p299_p0)
}
 0x137   :  { %s303_s28 = scalar_lea.hbm %s418_s3, 128 }
 0x138   :  { %p304_p1 = scmp.ne.s32.totalorder %s418_s3, %s303_s28  ;;  %p307_p2 = scmp.lt.u32.totalorder %s303_s28, %s418_s3 }
 0x13a   :  { %p309_p3 = pnand %p307_p2, %p304_p1 }
 0x13c   :  { %312 = shalt.err (!%p309_p3)
}
 0x13d   :  { %183 = dma.vmem_to_hbm [thread:$0]  %s178_s22, 128, %s418_s3, [#allocation5], %s321_s24, %s321_s24, %s322_s25  }
 0x13e   :  { %317 = dma.done.wait [#allocation5], 128  }
 0x13f   :  { %318 = vsyncadd [#allocation5], 4294967168 }
 0x140   :  { %187 = vsyncpa [#allocation4], 1 }
 0x141   :  { %188 = vsyncpa [#allocation7], 1 }
 0x142   :  { %189 = vsyncpa [#allocation5], 1 }

// kernel: nlp_embedder_forward.16
= control target key start
LH: loop header
LB: loop body
LE: loop exit
PB: predicated region body
PF: predicated region fallthrough
CT: control target
= control target key end

     0   :  { %11 = vsyncpa [#allocation4], 0  ;;  %s670_s0 = inlined_call_operand.hbm [shape: bf16[16,64], index: 0, kind: input, shape index: {}]   ;;  %s671_s1 = inlined_call_operand.hbm [shape: bf16[64,32], index: 1, kind: input, shape index: {}]   ;;  %s672_s2 = inlined_call_operand.hbm [shape: f32[1,32], index: 2, kind: input, shape index: {}]   ;;  %s673_s3 = inlined_call_operand.hbm [shape: bf16[16,32], index: 3, kind: input, shape index: {}]   ;;  %s674_s4 = inlined_call_operand.hbm [shape: f32[1,32], index: 4, kind: input, shape index: {}]   ;;  %s675_s5 = inlined_call_operand.hbm [shape: f32[1,32], index: 5, kind: input, shape index: {}]   ;;  %s676_s6 = inlined_call_operand.hbm [shape: bf16[16,32], index: 6, kind: output, shape index: {}]  }
   0x1   :  { %12 = vsyncpa [#allocation7], 0 }
   0x2   :  { %13 = vsyncpa [#allocation10], 0 }
   0x3   :  { %14 = vsyncpa [#allocation13], 0 }
   0x4   :  { %15 = vsyncpa [#allocation5], 0  ;;  %s513_s21 = smov [#allocation6]   ;;  %s514_s23 = smov [#allocation9]  }
   0x5   :  { %s33_s22 = sshll.u32 %s513_s21, 4  ;;  %s55_s24 = sshll.u32 %s514_s23, 4  ;;  %s34_s22 = int_to_ptr.vmem [resolvable:$true] %s33_s22  ;;  %s559_s24 = int_to_ptr.vmem [resolvable:$true] %s55_s24 }
   0x6   :  { %s349_s27 = scalar_lea.hbm %s671_s1, 512 }
   0x7   :  { %p350_p0 = scmp.ne.s32.totalorder %s671_s1, %s349_s27  ;;  %p353_p1 = scmp.lt.u32.totalorder %s349_s27, %s671_s1 }
   0x9   :  { %p355_p2 = pnand %p353_p1, %p350_p0 }
   0xb   :  { %358 = shalt.err (!%p355_p2)
}
   0xc   :  { %s359_s8 = scalar_lea.vmem %s34_s22, 512  ;;  %p364_p4 = scmp.lt.s32.totalorder %s34_s22, %s34_s22 }
   0xd   :  { %p360_p3 = scmp.ne.s32.totalorder %s34_s22, %s359_s8  ;;  %p365_p5 = scmp.lt.s32.totalorder %s359_s8, %s359_s8 }
   0xf   :  { %p366_p6 = por %p365_p5, %p364_p4 }
  0x11   :  { %p367_p7 = pnand %p366_p6, %p360_p3 }
  0x13   :  { %370 = shalt.err (!%p367_p7)
}
  0x14   :  { %s515_s9 = smov 64   ;;  %s516_s10 = smov 4  }
  0x15   :  { %39 = dma.hbm_to_vmem [thread:$0]  %s671_s1, 512, %s34_s22, [#allocation7], %s515_s9, %s515_s9, %s516_s10  }
  0x16   :  { %s371_s15 = scalar_lea.hbm %s673_s3, 128 }
  0x17   :  { %p372_p8 = scmp.ne.s32.totalorder %s673_s3, %s371_s15  ;;  %p375_p9 = scmp.lt.u32.totalorder %s371_s15, %s673_s3 }
  0x19   :  { %p377_p10 = pnand %p375_p9, %p372_p8 }
  0x1b   :  { %380 = shalt.err (!%p377_p10)
}
  0x1c   :  { %s381_s20 = scalar_lea.vmem %s559_s24, 128  ;;  %p386_p12 = scmp.lt.s32.totalorder %s559_s24, %s559_s24 }
  0x1d   :  { %p382_p11 = scmp.ne.s32.totalorder %s559_s24, %s381_s20  ;;  %p387_p13 = scmp.lt.s32.totalorder %s381_s20, %s381_s20 }
  0x1f   :  { %p388_p0 = por %p387_p13, %p386_p12 }
  0x21   :  { %p389_p1 = pnand %p388_p0, %p382_p11 }
  0x23   :  { %392 = shalt.err (!%p389_p1)
}
  0x24   :  { %61 = dma.hbm_to_vmem [thread:$0]  %s673_s3, 128, %s559_s24, [#allocation10], %s515_s9, %s515_s9, %s516_s10  }
  0x25   :  { %s517_s22 = smov [#allocation3]   ;;  %s518_s25 = smov [#allocation8]  }
  0x26   :  { %s21_s23 = sshll.u32 %s517_s22, 4  ;;  %s46_s26 = sshll.u32 %s518_s25, 4  ;;  %s22_s23 = int_to_ptr.vmem [resolvable:$true] %s21_s23  ;;  %s47_s26 = int_to_ptr.vmem [resolvable:$true] %s46_s26 }
  0x27   :  { %s393_s29 = scalar_lea.hbm %s670_s0, 128 }
  0x28   :  { %p394_p2 = scmp.ne.s32.totalorder %s670_s0, %s393_s29  ;;  %p397_p3 = scmp.lt.u32.totalorder %s393_s29, %s670_s0 }
  0x2a   :  { %p399_p4 = pnand %p397_p3, %p394_p2 }
  0x2c   :  { %402 = shalt.err (!%p399_p4)
}
  0x2d   :  { %s403_s3 = scalar_lea.vmem %s22_s23, 128  ;;  %p408_p6 = scmp.lt.s32.totalorder %s22_s23, %s22_s23 }
  0x2e   :  { %p404_p5 = scmp.ne.s32.totalorder %s22_s23, %s403_s3  ;;  %p409_p7 = scmp.lt.s32.totalorder %s403_s3, %s403_s3 }
  0x30   :  { %p410_p8 = por %p409_p7, %p408_p6 }
  0x32   :  { %p411_p9 = pnand %p410_p8, %p404_p5 }
  0x34   :  { %414 = shalt.err (!%p411_p9)
}
  0x35   :  { %27 = dma.hbm_to_vmem [thread:$0]  %s670_s0, 128, %s22_s23, [#allocation4], %s515_s9, %s515_s9, %s516_s10  }
  0x36   :  { %s415_s15 = scalar_lea.hbm %s672_s2, 16 }
  0x37   :  { %p416_p10 = scmp.ne.s32.totalorder %s672_s2, %s415_s15  ;;  %p419_p11 = scmp.lt.u32.totalorder %s415_s15, %s672_s2 }
  0x39   :  { %p421_p12 = pnand %p419_p11, %p416_p10 }
  0x3b   :  { %424 = shalt.err (!%p421_p12)
}
  0x3c   :  { %s425_s20 = scalar_lea.vmem %s47_s26, 16  ;;  %s429_s1 = scalar_lea.vmem %s47_s26, 32 }
  0x3d   :  { %p426_p13 = scmp.ne.s32.totalorder %s47_s26, %s425_s20  ;;  %p430_p0 = scmp.lt.s32.totalorder %s47_s26, %s47_s26 }
  0x3e   :  { %p431_p1 = scmp.lt.s32.totalorder %s429_s1, %s425_s20 }
  0x40   :  { %p432_p2 = por %p431_p1, %p430_p0 }
  0x42   :  { %p433_p3 = pnand %p432_p2, %p426_p13 }
  0x44   :  { %436 = shalt.err (!%p433_p3)
}
  0x45   :  { %49 = dma.hbm_to_vmem [thread:$0]  %s672_s2, 16, %s47_s26, [#allocation7]  }
  0x46   :  { %s519_s22 = smov [#allocation11]   ;;  %s520_s25 = smov [#allocation12]  }
  0x47   :  { %s68_s23 = sshll.u32 %s519_s22, 4  ;;  %s78_s27 = sshll.u32 %s520_s25, 4  ;;  %s69_s23 = int_to_ptr.vmem [resolvable:$true] %s68_s23  ;;  %s79_s27 = int_to_ptr.vmem [resolvable:$true] %s78_s27 }
  0x48   :  { %s437_s30 = scalar_lea.hbm %s674_s4, 16 }
  0x49   :  { %p438_p4 = scmp.ne.s32.totalorder %s674_s4, %s437_s30  ;;  %p441_p5 = scmp.lt.u32.totalorder %s437_s30, %s674_s4 }
  0x4b   :  { %p443_p6 = pnand %p441_p5, %p438_p4 }
  0x4d   :  { %446 = shalt.err (!%p443_p6)
}
  0x4e   :  { %s447_s2 = scalar_lea.vmem %s69_s23, 16  ;;  %s451_s26 = scalar_lea.vmem %s69_s23, 32 }
  0x4f   :  { %p448_p7 = scmp.ne.s32.totalorder %s69_s23, %s447_s2  ;;  %p452_p8 = scmp.lt.s32.totalorder %s69_s23, %s69_s23 }
  0x50   :  { %p453_p9 = scmp.lt.s32.totalorder %s451_s26, %s447_s2 }
  0x52   :  { %p454_p10 = por %p453_p9, %p452_p8 }
  0x54   :  { %p455_p11 = pnand %p454_p10, %p448_p7 }
  0x56   :  { %458 = shalt.err (!%p455_p11)
}
  0x57   :  { %71 = dma.hbm_to_vmem [thread:$0]  %s674_s4, 16, %s69_s23, [#allocation10]  }
  0x58   :  { %s459_s15 = scalar_lea.hbm %s675_s5, 16 }
  0x59   :  { %p460_p12 = scmp.ne.s32.totalorder %s675_s5, %s459_s15  ;;  %p463_p13 = scmp.lt.u32.totalorder %s459_s15, %s675_s5 }
  0x5b   :  { %p465_p0 = pnand %p463_p13, %p460_p12 }
  0x5d   :  { %468 = shalt.err (!%p465_p0)
}
  0x5e   :  { %s469_s20 = scalar_lea.vmem %s79_s27, 16  ;;  %s473_s1 = scalar_lea.vmem %s79_s27, 32 }
  0x5f   :  { %p470_p1 = scmp.ne.s32.totalorder %s79_s27, %s469_s20  ;;  %p474_p2 = scmp.lt.s32.totalorder %s79_s27, %s79_s27 }
  0x60   :  { %p475_p3 = scmp.lt.s32.totalorder %s473_s1, %s469_s20 }
  0x62   :  { %p476_p4 = por %p475_p3, %p474_p2 }
  0x64   :  { %p477_p5 = pnand %p476_p4, %p470_p1 }
  0x66   :  { %480 = shalt.err (!%p477_p5)
}
  0x67   :  { %81 = dma.hbm_to_vmem [thread:$0]  %s675_s5, 16, %s79_s27, [#allocation13]  }
  0x68   :  { %503 = dma.done.wait [#allocation4], 128  }
  0x69   :  { %504 = vsyncadd [#allocation4], 4294967168 }
  0x6a   :  { %505 = dma.done.wait [#allocation7], 528  }
  0x6b   :  { %506 = vsyncadd [#allocation7], 4294966768 }
  0x6c   :  { %507 = dma.done.wait [#allocation10], 144  }
  0x6d   :  { %508 = vsyncadd [#allocation10], 4294967152 }
  0x6e   :  { %509 = dma.done.wait [#allocation13], 16  }
  0x6f   :  { %510 = vsyncadd [#allocation13], 4294967280  ;;  %vm105_vm0 = vcmask 261120   ;;  %v521_v0 = vmov 0.0   ;;  %vm522_vm1 = vmmov 0   ;;  %v340_v1 = vld [vmem:[#allocation6] sm:$0xff]  }
  0x70   :  { %317 = vmatprep.subr.bf16.mxu0 %v521_v0  ;;  %325 = vmatprep.mubr.msk.bf16.mxu0 %vm522_vm1, %v521_v0  ;;  %106 = vst.msk [vmem:[#allocation2] sm:$0xff] %vm105_vm0, %v521_v0  ;;  %107 = vst.msk [vmem:[#allocation2 + $0x8] sm:$0xff] %vm105_vm0, %v521_v0  ;;  %v341_v2 = vld [vmem:[#allocation6 + $0x8] sm:$0xff]   ;;  %v342_v3 = vld [vmem:[#allocation6 + $0x10] sm:$0xff]   ;;  %vm149_vm2 = vcmask 523264   ;;  %vm272_vm3 = vcmask 257024  }
  0x71   :  { %318 = vmatpush3.bf16.msra.mxu0 %v340_v1  ;;  %v343_v4 = vld [vmem:[#allocation6 + $0x18] sm:$0xff]   ;;  %v309_v14 = vld [vmem:[#allocation9] sm:$0xff]   ;;  %v301_v15 = vld [vmem:[#allocation8] ss:$0 sm:$0xff]  ;;  %s523_s5 = smov [#allocation14]  }
  0x72   :  { %319 = vmatprep.subr.bf16.mxu0 %v521_v0  ;;  %v344_v5 = vld [vmem:[#allocation3] sm:$0xff]   ;;  %v310_v16 = vunpack.c.l.bf16 %v309_v14  ;;  %v311_v19 = vunpack.c.h.bf16 %v309_v14  ;;  %v302_v43 = vld [vmem:[#allocation11] ss:$0 sm:$0xff]  ;;  %v303_v45 = vld [vmem:[#allocation12] ss:$0 sm:$0xff]  ;;  %s280_s21 = sshll.u32 %s523_s5, 4  ;;  %s281_s21 = int_to_ptr.vmem [resolvable:$true] %s280_s21 }
  0x73   :  { %s481_s22 = scalar_lea.vmem %s281_s21, 128  ;;  %p486_p7 = scmp.lt.s32.totalorder %s281_s21, %s281_s21 }
  0x74   :  { %p482_p6 = scmp.ne.s32.totalorder %s281_s21, %s481_s22  ;;  %p487_p8 = scmp.lt.s32.totalorder %s481_s22, %s481_s22 }
  0x75   :  { %320 = vmatpush3.bf16.msra.mxu0 %v341_v2 }
  0x76   :  { %321 = vmatprep.subr.bf16.mxu0 %v521_v0  ;;  %p488_p9 = por %p487_p8, %p486_p7 }
  0x77   :  { %v108_v6 = vld [vmem:[#allocation2] sm:$0xff]  ;;  %v109_v8 = vld [vmem:[#allocation2 + $0x8] sm:$0xff] }
  0x78   :  { %p489_p10 = pnand %p488_p9, %p482_p6 }
  0x79   :  { %322 = vmatpush3.bf16.msra.mxu0 %v342_v3 }
  0x7a   :  { %323 = vmatprep.subr.bf16.mxu0 %v521_v0 }
  0x7d   :  { %324 = vmatpush3.bf16.msra.mxu0 %v343_v4 }
  0x80   :  { %326 = vmatmul.mubr.msk.bf16.vlgmr.msra.gmra.mrb[0].mxu0 %vm149_vm2, %v344_v5 }
 0x153   :  { %v187_v7 = vpop.f32.mrb[0].mxu0 }
 0x154   :  { %v194_v9 = vadd.f32 %v187_v7, %v108_v6  ;;  %v327_v10 = vpop.f32.mrb[1].mxu0 }
 0x155   :  { %v190_v11 = vpop.f32.mrb[2].mxu0 }
 0x156   :  { %197 = vst.msk [vmem:[#allocation2] sm:$0xff] %vm105_vm0, %v194_v9  ;;  %v195_v12 = vadd.f32 %v190_v11, %v109_v8  ;;  %v328_v13 = vpop.f32.mrb[3].mxu0 }
 0x158   :  { %198 = vst.msk [vmem:[#allocation2 + $0x8] sm:$0xff] %vm105_vm0, %v195_v12 }
 0x15d   :  { %v202_v17 = vld [vmem:[#allocation2] sm:$0xff] }
 0x15e   :  { %v211_v18 = vadd.f32 %v301_v15, %v202_v17 }
 0x15f   :  { %v203_v20 = vld [vmem:[#allocation2 + $0x8] sm:$0xff] }
 0x160   :  { %v217_v21 = vadd.f32 %v310_v16, %v211_v18  ;;  %v212_v22 = vadd.f32 %v301_v15, %v203_v20 }
 0x162   :  { %v219_v23 = vsel %vm105_vm0, %v217_v21, 0.0  ;;  %v218_v24 = vadd.f32 %v311_v19, %v212_v22 }
 0x163   :  { %220 = vadd.xlane.f32.xlu0 %v219_v23 }
 0x164   :  { %v222_v25 = vsel %vm105_vm0, %v218_v24, 0.0 }
 0x167   :  { %223 = vadd.xlane.f32.xlu0 %v222_v25 }
 0x1f0   :  { %v221_v26 = vpop.xlane.xlu0 %220 }
 0x1f1   :  { %v226_v27 = vmul.f32 0.03125, %v221_v26 }
 0x1f3   :  { %v228_v28 = vsub.f32 %v217_v21, %v226_v27 }
 0x1f4   :  { %v224_v29 = vpop.xlane.xlu0 %223 }
 0x1f5   :  { %v227_v30 = vmul.f32 0.03125, %v224_v29  ;;  %v230_v31 = vmul.f32 %v228_v28, %v228_v28 }
 0x1f7   :  { %v229_v32 = vsub.f32 %v218_v24, %v227_v30  ;;  %v232_v33 = vsel %vm105_vm0, %v230_v31, 0.0 }
 0x1f8   :  { %233 = vadd.xlane.f32.xlu1 %v232_v33 }
 0x1f9   :  { %v231_v34 = vmul.f32 %v229_v32, %v229_v32 }
 0x1fb   :  { %v235_v35 = vsel %vm105_vm0, %v231_v34, 0.0 }
 0x1fc   :  { %236 = vadd.xlane.f32.xlu1 %v235_v35 }
 0x285   :  { %v234_v36 = vpop.xlane.xlu1 %233 }
 0x286   :  { %v238_v37 = vmul.f32 0.03125, %v234_v36 }
 0x288   :  { %v240_v38 = vadd.f32 1e-12, %v238_v37 }
 0x289   :  { %v237_v39 = vpop.xlane.xlu1 %236 }
 0x28a   :  { %345 = vrsqrt.f32 %v240_v38  ;;  %v239_v40 = vmul.f32 0.03125, %v237_v39 }
 0x28c   :  { %v241_v41 = vadd.f32 1e-12, %v239_v40 }
 0x28e   :  { %347 = vrsqrt.f32 %v241_v41 }
 0x294   :  { %v346_v42 = vpop.eup %345 }
 0x295   :  { %v244_v44 = vmul.f32 %v346_v42, %v228_v28 }
 0x297   :  { %v253_v46 = vmul.f32 %v302_v43, %v244_v44 }
 0x298   :  { %v348_v47 = vpop.eup %347 }
 0x299   :  { %v245_v48 = vmul.f32 %v348_v47, %v229_v32  ;;  %v262_v49 = vadd.f32 %v303_v45, %v253_v46 }
 0x29b   :  { %v254_v50 = vmul.f32 %v302_v43, %v245_v48  ;;  %v306_v51 = vpack.c.bf16 %v262_v49, %v262_v49 }
 0x29d   :  { %v263_v52 = vadd.f32 %v303_v45, %v254_v50  ;;  %273 = vst.msk [vmem:[#allocation14] sm:$0xf] %vm272_vm3, %v306_v51 }
 0x29f   :  { %v307_v53 = vpack.c.bf16 %v263_v52, %v263_v52 }
 0x2a1   :  { %274 = vst.msk [vmem:[#allocation14 + $0x4] sm:$0xf] %vm272_vm3, %v307_v53 }
 0x2a2   :  { %492 = shalt.err (!%p489_p10)
}
 0x2a3   :  { %s493_s27 = scalar_lea.hbm %s676_s6, 128 }
 0x2a4   :  { %p494_p11 = scmp.ne.s32.totalorder %s676_s6, %s493_s27  ;;  %p497_p12 = scmp.lt.u32.totalorder %s493_s27, %s676_s6 }
 0x2a6   :  { %p499_p13 = pnand %p497_p12, %p494_p11 }
 0x2a8   :  { %502 = shalt.err (!%p499_p13)
}
 0x2a9   :  { %286 = dma.vmem_to_hbm [thread:$0]  %s281_s21, 128, %s676_s6, [#allocation5], %s515_s9, %s515_s9, %s516_s10  }
 0x2aa   :  { %511 = dma.done.wait [#allocation5], 128  }
 0x2ab   :  { %512 = vsyncadd [#allocation5], 4294967168 }
 0x2ac   :  { %290 = vsyncpa [#allocation4], 1 }
 0x2ad   :  { %291 = vsyncpa [#allocation7], 1 }
 0x2ae   :  { %292 = vsyncpa [#allocation10], 1 }
 0x2af   :  { %293 = vsyncpa [#allocation13], 1 }
 0x2b0   :  { %294 = vsyncpa [#allocation5], 1 }

</bundles_post_ra>
